<compile_context>
chip_gen: v7x
topology: tpu7x:2x2x1
jax: 0.10.0
libtpu: 0.0.40
codegen_flags: <defaults>
</compile_context>

<pallas_src>
import math
import functools

import jax
import jax.numpy as jnp
from jax import lax
from jax.experimental import pallas as pl
from jax.experimental.pallas import tpu as pltpu


def _round_up(x, m):
    return ((x + m - 1) // m) * m


def _vmem_budget_bytes():
    """~75% of physical VMEM (leaves headroom for compiler-internal scratch)."""
    cap = 128 * 1024 * 1024
    try:
        cap = int(getattr(pltpu.get_tpu_info(), "vmem_capacity_bytes", cap))
    except Exception:
        pass
    return (cap * 3) // 4


def _pick_q_tile(Sp, H, Hp, c_bytes, o_bytes, budget):
    """Largest 128-multiple query tile whose working set fits the VMEM budget."""
    fixed = (
        2 * (2 * H * H + H * Hp) * c_bytes   # wq/wk/wv blocks (double-buffered)
        + 2 * Sp * H * c_bytes                # resident x block (double-buffered)
        + (H * Sp + Sp * Hp) * c_bytes        # K^T + V scratch
        + 2 * (2 * H + Hp) * 4                # biases
    )
    for tq in (1024, 512, 256, 128):
        if Sp % tq:
            continue
        per_tile = (
            2 * tq * Hp * o_bytes    # out tile (double-buffered)
            + 2 * tq * Sp * o_bytes  # attn tile (double-buffered)
            + 4 * tq * Sp * 4        # in-flight f32 temporaries (scores/e/weights)
        )
        if fixed + per_tile <= budget:
            return tq
    return 128


def _self_attention_kernel(x_ref, wq_ref, bq_ref, wk_ref, bk_ref, wv_ref, bv_ref,
                           out_ref, attn_ref, kt_ref, v_ref,
                           *, valid_s, compute_dtype):
    """One grid step = (batch element b, query tile qt).

    x_ref   : (Sp, H)  full (padded) sequence, resident across q tiles
    wq/bq   : (H, H), (1, H)   Q projection (1/sqrt(H) pre-folded)
    wk/bk   : (H, H), (1, H)   K projection
    wv/bv   : (H, Hp), (1, Hp) V projection (output dim zero-padded to Hp)
    out_ref : (tq, Hp) attention-output tile (lane-dense)
    attn_ref: (tq, Sp) attention-weights tile (lane-dense)
    kt_ref  : (H, Sp)  scratch: K^T in compute_dtype, built once per batch
    v_ref   : (Sp, Hp) scratch: V   in compute_dtype, built once per batch
    """
    qt = pl.program_id(1)
    Sp, H = x_ref.shape
    tq = out_ref.shape[0]

    # K/V projection + single K transpose, once per batch element (q axis is
    # "arbitrary", so tile 0 always runs first; scratch persists across steps).
    @pl.when(qt == 0)
    def _():
        x_all = x_ref[...]
        k = jnp.dot(x_all, wk_ref[...], preferred_element_type=jnp.float32) + bk_ref[...]
        v = jnp.dot(x_all, wv_ref[...], preferred_element_type=jnp.float32) + bv_ref[...]
        kt_ref[...] = k.T.astype(compute_dtype)
        v_ref[...] = v.astype(compute_dtype)

    # Per-tile Q projection (weights already scaled by 1/sqrt(H)).
    row0 = pl.multiple_of(qt * tq, tq)
    x_tile = x_ref[pl.ds(row0, tq), :]
    q = (jnp.dot(x_tile, wq_ref[...], preferred_element_type=jnp.float32)
         + bq_ref[...]).astype(compute_dtype)                     # (tq, H)

    # Scores: plain NN matmul against the pre-transposed K.
    scores = jnp.dot(q, kt_ref[...], preferred_element_type=jnp.float32)  # (tq, Sp)

    # Mask padded key columns (static: only emitted when Sp > valid_s).
    if valid_s < Sp:
        key_idx = lax.broadcasted_iota(jnp.int32, scores.shape, 1)
        scores = jnp.where(key_idx < valid_s, scores, -jnp.inf)

    # Numerically-stable softmax in f32; exact reciprocal (weights are output).
    m = jnp.max(scores, axis=-1, keepdims=True)
    e = jnp.exp(scores - m)
    denom = jnp.sum(e, axis=-1, keepdims=True)
    weights_f32 = e * pl.reciprocal(denom)                          # (tq, Sp)
    weights = weights_f32.astype(compute_dtype)

    out = jnp.dot(weights, v_ref[...], preferred_element_type=jnp.float32)  # (tq, Hp)

    out_ref[...] = out.astype(out_ref.dtype)
    attn_ref[...] = weights_f32.astype(attn_ref.dtype)


def self_attention(x, wq, bq, wk, bk, wv, bv, *, compute_dtype=jnp.float32):
    """Pallas TPU equivalent of the torch SelfAttention.forward.

    x        : (B, S, H)
    wq/wk/wv : (H, H) torch layout (out, in)
    bq/bk/bv : (H,)
    Returns (attention_output (B,S,H), attention_weights (B,S,S)) in x.dtype.
    """
    B, S, H = x.shape
    out_dtype = x.dtype
    inv_t = 1.0 / math.sqrt(float(H))

    # Pad to 128-multiples: lane-dense output tiles, bounded VMEM tiles.
    Sp = _round_up(S, 128)
    Hp = _round_up(H, 128)

    c_bytes = jnp.dtype(compute_dtype).itemsize
    o_bytes = jnp.dtype(out_dtype).itemsize
    budget = _vmem_budget_bytes()
    tq = _pick_q_tile(Sp, H, Hp, c_bytes, o_bytes, budget)
    n_qt = Sp // tq

    x_p = x if Sp == S else jnp.pad(x, ((0, 0), (0, Sp - S), (0, 0)))
    x_p = x_p.astype(compute_dtype)

    # Pre-transposed weights; fold 1/sqrt(H) into Q; zero-pad V's output dim.
    w_q = (wq.T * inv_t).astype(compute_dtype)
    b_q = (bq * inv_t).reshape(1, H).astype(jnp.float32)
    w_k = wk.T.astype(compute_dtype)
    b_k = bk.reshape(1, H).astype(jnp.float32)
    w_v = jnp.pad(wv.T, ((0, 0), (0, Hp - H))).astype(compute_dtype)
    b_v = jnp.pad(bv, (0, Hp - H)).reshape(1, Hp).astype(jnp.float32)

    kernel = functools.partial(_self_attention_kernel,
                               valid_s=S, compute_dtype=compute_dtype)

    const_map = lambda b, q: (0, 0)

    out_p, attn_p = pl.pallas_call(
        kernel,
        out_shape=(
            jax.ShapeDtypeStruct((B, Sp, Hp), out_dtype),
            jax.ShapeDtypeStruct((B, Sp, Sp), out_dtype),
        ),
        grid_spec=pltpu.PrefetchScalarGridSpec(
            num_scalar_prefetch=0,
            grid=(B, n_qt),
            in_specs=[
                # Full (Sp, H) sequence, resident across the q-tile axis.
                pl.BlockSpec((pl.Squeezed(), Sp, H), lambda b, q: (b, 0, 0)),
                pl.BlockSpec((H, H), const_map),   # wq (scaled)
                pl.BlockSpec((1, H), const_map),   # bq (scaled)
                pl.BlockSpec((H, H), const_map),   # wk
                pl.BlockSpec((1, H), const_map),   # bk
                pl.BlockSpec((H, Hp), const_map),  # wv (padded)
                pl.BlockSpec((1, Hp), const_map),  # bv (padded)
            ],
            out_specs=[
                pl.BlockSpec((pl.Squeezed(), tq, Hp), lambda b, q: (b, q, 0)),
                pl.BlockSpec((pl.Squeezed(), tq, Sp), lambda b, q: (b, q, 0)),
            ],
            scratch_shapes=[
                pltpu.VMEM((H, Sp), compute_dtype),   # K^T
                pltpu.VMEM((Sp, Hp), compute_dtype),  # V
            ],
        ),
        compiler_params=pltpu.CompilerParams(
            # Batch axis independent (megacore-shardable); q-tile axis reuses
            # the per-batch K^T/V scratch so it must stay sequential.
            # TODO(synk): on v7x with B==1, hoist the K/V projection out of the
            # grid so the q-tile axis can be marked "parallel" across both TCs.
            dimension_semantics=("parallel", "arbitrary"),
            vmem_limit_bytes=budget,
        ),
    )(x_p, w_q, b_q, w_k, b_k, w_v, b_v)

    # Slice away the S / H padding.
    return out_p[:, :S, :H], attn_p[:, :S, :S]


def _reference(x, wq, bq, wk, bk, wv, bv):
    # Pure-JAX reference mirroring the PyTorch forward.
    q = x @ wq.T + bq
    k = x @ wk.T + bk
    v = x @ wv.T + bv
    scores = jnp.einsum("bqh,bkh->bqk", q, k) / math.sqrt(x.shape[-1])
    w = jax.nn.softmax(scores, axis=-1)
    return jnp.einsum("bqk,bkh->bqh", w, v), w


if __name__ == "__main__":
    B, S, H = 2, 8, 32
    key = jax.random.PRNGKey(0)
    kx, kwq, kbq, kwk, kbk, kwv, kbv = jax.random.split(key, 7)

    bound = 1.0 / math.sqrt(H)
    x = jax.random.normal(kx, (B, S, H), dtype=jnp.float32)
    wq = jax.random.uniform(kwq, (H, H), jnp.float32, -bound, bound)
    bq = jax.random.uniform(kbq, (H,), jnp.float32, -bound, bound)
    wk = jax.random.uniform(kwk, (H, H), jnp.float32, -bound, bound)
    bk = jax.random.uniform(kbk, (H,), jnp.float32, -bound, bound)
    wv = jax.random.uniform(kwv, (H, H), jnp.float32, -bound, bound)
    bv = jax.random.uniform(kbv, (H,), jnp.float32, -bound, bound)

    ref_out, ref_attn = _reference(x, wq, bq, wk, bk, wv, bv)

    # f32 MXU-input path (exercises the S->128 / H->128 padding + key masking).
    out, attn = self_attention(x, wq, bq, wk, bk, wv, bv)
    jax.block_until_ready((out, attn))
    assert jnp.allclose(out, ref_out, atol=5e-3, rtol=5e-3), "f32 output mismatch"
    assert jnp.allclose(attn, ref_attn, atol=5e-3, rtol=5e-3), "f32 weights mismatch"

    # bf16 MXU-input path (fast path on v6e/v7x), f32 accumulation throughout.
    out_bf, attn_bf = self_attention(x, wq, bq, wk, bk, wv, bv,
                                     compute_dtype=jnp.bfloat16)
    jax.block_until_ready((out_bf, attn_bf))
    assert jnp.allclose(out_bf, ref_out, atol=5e-2, rtol=5e-2), "bf16 output mismatch"
    assert jnp.allclose(attn_bf, ref_attn, atol=5e-2, rtol=5e-2), "bf16 weights mismatch"

    print("KERNEL_OK")
</pallas_src>

<mosaic_0001>
module attributes {stable_mosaic.version = 11 : i64} {
  func.func @_self_attention_kernel(%arg0: i32, %arg1: i32, %arg2: memref<1x128x32xf32, #tpu.memory_space<vmem>>, %arg3: memref<32x32xf32, #tpu.memory_space<vmem>>, %arg4: memref<1x32xf32, #tpu.memory_space<vmem>>, %arg5: memref<32x32xf32, #tpu.memory_space<vmem>>, %arg6: memref<1x32xf32, #tpu.memory_space<vmem>>, %arg7: memref<32x128xf32, #tpu.memory_space<vmem>>, %arg8: memref<1x128xf32, #tpu.memory_space<vmem>>, %arg9: memref<1x128x128xf32, #tpu.memory_space<vmem>>, %arg10: memref<1x128x128xf32, #tpu.memory_space<vmem>>, %arg11: memref<32x128xf32, #tpu.memory_space<vmem>>, %arg12: memref<128x128xf32, #tpu.memory_space<vmem>>) attributes {dimension_semantics = [#tpu.dimension_semantics<parallel>, #tpu.dimension_semantics<arbitrary>], iteration_bounds = array<i64: 2, 1>, scalar_prefetch = 0 : i64, scratch_operands = 2 : i64, tpu.core_type = #tpu.core_type<tc>, window_params = [{transform_indices = @transform_0, window_bounds = array<i64: 1, 128, 32>}, {pipeline_mode = #tpu.pipeline_mode<synchronous>, transform_indices = @transform_1, window_bounds = array<i64: 32, 32>}, {pipeline_mode = #tpu.pipeline_mode<synchronous>, transform_indices = @transform_2, window_bounds = array<i64: 1, 32>}, {pipeline_mode = #tpu.pipeline_mode<synchronous>, transform_indices = @transform_3, window_bounds = array<i64: 32, 32>}, {pipeline_mode = #tpu.pipeline_mode<synchronous>, transform_indices = @transform_4, window_bounds = array<i64: 1, 32>}, {pipeline_mode = #tpu.pipeline_mode<synchronous>, transform_indices = @transform_5, window_bounds = array<i64: 32, 128>}, {pipeline_mode = #tpu.pipeline_mode<synchronous>, transform_indices = @transform_6, window_bounds = array<i64: 1, 128>}, {transform_indices = @transform_7, window_bounds = array<i64: 1, 128, 128>}, {transform_indices = @transform_8, window_bounds = array<i64: 1, 128, 128>}]} {
    %c0_i32 = arith.constant 0 : i32
    %0 = arith.cmpi eq, %arg1, %c0_i32 : i32
    %1 = arith.extui %0 : i1 to i32
    %c0_i32_0 = arith.constant 0 : i32
    %2 = arith.cmpi ne, %1, %c0_i32_0 : i32
    scf.if %2 {
      %c0_21 = arith.constant 0 : index
      %c0_22 = arith.constant 0 : index
      %c0_23 = arith.constant 0 : index
      %38 = vector.load %arg2[%c0_21, %c0_22, %c0_23] : memref<1x128x32xf32, #tpu.memory_space<vmem>>, vector<1x128x32xf32>
      %39 = vector.shape_cast %38 : vector<1x128x32xf32> to vector<128x32xf32>
      %c0_24 = arith.constant 0 : index
      %c0_25 = arith.constant 0 : index
      %40 = vector.load %arg5[%c0_24, %c0_25] : memref<32x32xf32, #tpu.memory_space<vmem>>, vector<32x32xf32>
      %cst_26 = arith.constant dense<0.000000e+00> : vector<128x32xf32>
      %41 = tpu.matmul %39, %40, %cst_26 {dimension_numbers = #tpu.dot_dimension_numbers<[1], [0], [0], [1], [0, 0, 1, 1], [], []>} : vector<128x32xf32>, vector<32x32xf32>, vector<128x32xf32> -> vector<128x32xf32>
      %c0_27 = arith.constant 0 : index
      %c0_28 = arith.constant 0 : index
      %42 = vector.load %arg6[%c0_27, %c0_28] : memref<1x32xf32, #tpu.memory_space<vmem>>, vector<1x32xf32>
      %43 = vector.broadcast %42 : vector<1x32xf32> to vector<128x32xf32>
      %44 = arith.addf %41, %43 : vector<128x32xf32>
      %c0_29 = arith.constant 0 : index
      %c0_30 = arith.constant 0 : index
      %45 = vector.load %arg7[%c0_29, %c0_30] : memref<32x128xf32, #tpu.memory_space<vmem>>, vector<32x128xf32>
      %cst_31 = arith.constant dense<0.000000e+00> : vector<128x128xf32>
      %46 = tpu.matmul %39, %45, %cst_31 {dimension_numbers = #tpu.dot_dimension_numbers<[1], [0], [0], [1], [0, 0, 1, 1], [], []>} : vector<128x32xf32>, vector<32x128xf32>, vector<128x128xf32> -> vector<128x128xf32>
      %c0_32 = arith.constant 0 : index
      %c0_33 = arith.constant 0 : index
      %47 = vector.load %arg8[%c0_32, %c0_33] : memref<1x128xf32, #tpu.memory_space<vmem>>, vector<1x128xf32>
      %48 = vector.broadcast %47 : vector<1x128xf32> to vector<128x128xf32>
      %49 = arith.addf %46, %48 : vector<128x128xf32>
      %50 = tpu.transpose %44, [1, 0] : vector<128x32xf32> -> vector<32x128xf32>
      %c0_34 = arith.constant 0 : index
      %c0_35 = arith.constant 0 : index
      %51 = vector.load %arg11[%c0_34, %c0_35] : memref<32x128xf32, #tpu.memory_space<vmem>>, vector<32x128xf32>
      tpu.vector_store %arg11[%c0_34, %c0_35], %50 {strides = array<i32>} : memref<32x128xf32, #tpu.memory_space<vmem>>, vector<32x128xf32>,
      %c0_36 = arith.constant 0 : index
      %c0_37 = arith.constant 0 : index
      %52 = vector.load %arg12[%c0_36, %c0_37] : memref<128x128xf32, #tpu.memory_space<vmem>>, vector<128x128xf32>
      tpu.vector_store %arg12[%c0_36, %c0_37], %49 {strides = array<i32>} : memref<128x128xf32, #tpu.memory_space<vmem>>, vector<128x128xf32>,
    } else {
    }
    %c128_i32 = arith.constant 128 : i32
    %3 = arith.muli %arg1, %c128_i32 : i32
    %4 = tpu.assume_multiple %3, 128 : i32
    %c0 = arith.constant 0 : index
    %5 = arith.index_cast %4 : i32 to index
    %c0_1 = arith.constant 0 : index
    %6 = vector.load %arg2[%c0, %5, %c0_1] : memref<1x128x32xf32, #tpu.memory_space<vmem>>, vector<1x128x32xf32>
    %7 = vector.shape_cast %6 : vector<1x128x32xf32> to vector<128x32xf32>
    %c0_2 = arith.constant 0 : index
    %c0_3 = arith.constant 0 : index
    %8 = vector.load %arg3[%c0_2, %c0_3] : memref<32x32xf32, #tpu.memory_space<vmem>>, vector<32x32xf32>
    %cst = arith.constant dense<0.000000e+00> : vector<128x32xf32>
    %9 = tpu.matmul %7, %8, %cst {dimension_numbers = #tpu.dot_dimension_numbers<[1], [0], [0], [1], [0, 0, 1, 1], [], []>} : vector<128x32xf32>, vector<32x32xf32>, vector<128x32xf32> -> vector<128x32xf32>
    %c0_4 = arith.constant 0 : index
    %c0_5 = arith.constant 0 : index
    %10 = vector.load %arg4[%c0_4, %c0_5] : memref<1x32xf32, #tpu.memory_space<vmem>>, vector<1x32xf32>
    %11 = vector.broadcast %10 : vector<1x32xf32> to vector<128x32xf32>
    %12 = arith.addf %9, %11 : vector<128x32xf32>
    %c0_6 = arith.constant 0 : index
    %c0_7 = arith.constant 0 : index
    %13 = vector.load %arg11[%c0_6, %c0_7] : memref<32x128xf32, #tpu.memory_space<vmem>>, vector<32x128xf32>
    %cst_8 = arith.constant dense<0.000000e+00> : vector<128x128xf32>
    %14 = tpu.matmul %12, %13, %cst_8 {dimension_numbers = #tpu.dot_dimension_numbers<[1], [0], [0], [1], [0, 0, 1, 1], [], []>} : vector<128x32xf32>, vector<32x128xf32>, vector<128x128xf32> -> vector<128x128xf32>
    %15 = tpu.iota {dimensions = array<i32: 1>} : vector<128x128xi32>
    %c8_i32 = arith.constant 8 : i32
    %16 = vector.broadcast %c8_i32 : i32 to vector<128x128xi32>
    %17 = arith.cmpi slt, %15, %16 : vector<128x128xi32>
    %cst_9 = arith.constant 0xFF800000 : f32
    %18 = vector.broadcast %cst_9 : f32 to vector<128x128xf32>
    %19 = arith.select %17, %14, %18 : vector<128x128xi1>, vector<128x128xf32>
    %cst_10 = arith.constant dense<0xFF800000> : vector<128xf32>
    %20 = vector.multi_reduction <maximumf>, %19, %cst_10 [1] : vector<128x128xf32> to vector<128xf32>
    %21 = vector.shape_cast %20 : vector<128xf32> to vector<128x1xf32>
    %22 = vector.broadcast %21 : vector<128x1xf32> to vector<128x128xf32>
    %23 = arith.subf %19, %22 : vector<128x128xf32>
    %24 = math.exp %23 : vector<128x128xf32>
    %cst_11 = arith.constant dense<0.000000e+00> : vector<128xf32>
    %25 = vector.multi_reduction <add>, %24, %cst_11 [1] : vector<128x128xf32> to vector<128xf32>
    %26 = vector.shape_cast %25 : vector<128xf32> to vector<128x1xf32>
    %27 = tpu.reciprocal %26 : vector<128x1xf32> -> vector<128x1xf32>
    %28 = vector.broadcast %27 : vector<128x1xf32> to vector<128x128xf32>
    %29 = arith.mulf %24, %28 : vector<128x128xf32>
    %c0_12 = arith.constant 0 : index
    %c0_13 = arith.constant 0 : index
    %30 = vector.load %arg12[%c0_12, %c0_13] : memref<128x128xf32, #tpu.memory_space<vmem>>, vector<128x128xf32>
    %cst_14 = arith.constant dense<0.000000e+00> : vector<128x128xf32>
    %31 = tpu.matmul %29, %30, %cst_14 {dimension_numbers = #tpu.dot_dimension_numbers<[1], [0], [0], [1], [0, 0, 1, 1], [], []>} : vector<128x128xf32>, vector<128x128xf32>, vector<128x128xf32> -> vector<128x128xf32>
    %c0_15 = arith.constant 0 : index
    %c0_16 = arith.constant 0 : index
    %c0_17 = arith.constant 0 : index
    %32 = vector.load %arg9[%c0_15, %c0_16, %c0_17] : memref<1x128x128xf32, #tpu.memory_space<vmem>>, vector<1x128x128xf32>
    %33 = vector.shape_cast %32 : vector<1x128x128xf32> to vector<128x128xf32>
    %34 = vector.shape_cast %31 : vector<128x128xf32> to vector<1x128x128xf32>
    tpu.vector_store %arg9[%c0_15, %c0_16, %c0_17], %34 {strides = array<i32>} : memref<1x128x128xf32, #tpu.memory_space<vmem>>, vector<1x128x128xf32>,
    %c0_18 = arith.constant 0 : index
    %c0_19 = arith.constant 0 : index
    %c0_20 = arith.constant 0 : index
    %35 = vector.load %arg10[%c0_18, %c0_19, %c0_20] : memref<1x128x128xf32, #tpu.memory_space<vmem>>, vector<1x128x128xf32>
    %36 = vector.shape_cast %35 : vector<1x128x128xf32> to vector<128x128xf32>
    %37 = vector.shape_cast %29 : vector<128x128xf32> to vector<1x128x128xf32>
    tpu.vector_store %arg10[%c0_18, %c0_19, %c0_20], %37 {strides = array<i32>} : memref<1x128x128xf32, #tpu.memory_space<vmem>>, vector<1x128x128xf32>,
    return
  }
  func.func @transform_0(%arg0: i32, %arg1: i32) -> (i32, i32, i32) {
    %c0_i32 = arith.constant 0 : i32
    %c0_i32_0 = arith.constant 0 : i32
    %c0_i32_1 = arith.constant 0 : i32
    return %arg0, %c0_i32, %c0_i32_0 : i32, i32, i32
  }
  func.func @transform_1(%arg0: i32, %arg1: i32) -> (i32, i32) {
    %c0_i32 = arith.constant 0 : i32
    %c0_i32_0 = arith.constant 0 : i32
    %c0_i32_1 = arith.constant 0 : i32
    return %c0_i32, %c0_i32_0 : i32, i32
  }
  func.func @transform_2(%arg0: i32, %arg1: i32) -> (i32, i32) {
    %c0_i32 = arith.constant 0 : i32
    %c0_i32_0 = arith.constant 0 : i32
    %c0_i32_1 = arith.constant 0 : i32
    return %c0_i32, %c0_i32_0 : i32, i32
  }
  func.func @transform_3(%arg0: i32, %arg1: i32) -> (i32, i32) {
    %c0_i32 = arith.constant 0 : i32
    %c0_i32_0 = arith.constant 0 : i32
    %c0_i32_1 = arith.constant 0 : i32
    return %c0_i32, %c0_i32_0 : i32, i32
  }
  func.func @transform_4(%arg0: i32, %arg1: i32) -> (i32, i32) {
    %c0_i32 = arith.constant 0 : i32
    %c0_i32_0 = arith.constant 0 : i32
    %c0_i32_1 = arith.constant 0 : i32
    return %c0_i32, %c0_i32_0 : i32, i32
  }
  func.func @transform_5(%arg0: i32, %arg1: i32) -> (i32, i32) {
    %c0_i32 = arith.constant 0 : i32
    %c0_i32_0 = arith.constant 0 : i32
    %c0_i32_1 = arith.constant 0 : i32
    return %c0_i32, %c0_i32_0 : i32, i32
  }
  func.func @transform_6(%arg0: i32, %arg1: i32) -> (i32, i32) {
    %c0_i32 = arith.constant 0 : i32
    %c0_i32_0 = arith.constant 0 : i32
    %c0_i32_1 = arith.constant 0 : i32
    return %c0_i32, %c0_i32_0 : i32, i32
  }
  func.func @transform_7(%arg0: i32, %arg1: i32) -> (i32, i32, i32) {
    %c0_i32 = arith.constant 0 : i32
    %c0_i32_0 = arith.constant 0 : i32
    return %arg0, %arg1, %c0_i32 : i32, i32, i32
  }
  func.func @transform_8(%arg0: i32, %arg1: i32) -> (i32, i32, i32) {
    %c0_i32 = arith.constant 0 : i32
    %c0_i32_0 = arith.constant 0 : i32
    return %arg0, %arg1, %c0_i32 : i32, i32, i32
  }
}

</mosaic_0001>

<bundles_post_ra>
// kernel: tpu_custom_call.1
= control target key start
LH: loop header
LB: loop body
LE: loop exit
PB: predicated region body
PF: predicated region fallthrough
CT: control target
= control target key end

     0   :  { %s3576_s0 = inlined_call_operand.hbm [shape: f32[2,128,32], index: 0, kind: input, shape index: {}]   ;;  %s3577_s1 = inlined_call_operand.hbm [shape: f32[32,32], index: 1, kind: input, shape index: {}]   ;;  %s3578_s2 = inlined_call_operand.hbm [shape: f32[1,32], index: 2, kind: input, shape index: {}]   ;;  %s3579_s3 = inlined_call_operand.hbm [shape: f32[32,32], index: 3, kind: input, shape index: {}]   ;;  %s3580_s4 = inlined_call_operand.hbm [shape: f32[1,32], index: 4, kind: input, shape index: {}]   ;;  %s3581_s5 = inlined_call_operand.hbm [shape: f32[32,128], index: 5, kind: input, shape index: {}]   ;;  %s3582_s6 = inlined_call_operand.hbm [shape: f32[1,128], index: 6, kind: input, shape index: {}]   ;;  %s3583_s7 = inlined_call_operand.hbm [shape: f32[2,128,128], index: 7, kind: output, shape index: {0}]   ;;  %s3584_s8 = inlined_call_operand.hbm [shape: f32[2,128,128], index: 8, kind: output, shape index: {1}]  }
   0x1   :  { %3593 = sst [smem:[#allocation25_spill]] %s3577_s1 }
   0x2   :  { %3594 = sst [smem:[#allocation26_spill]] %s3583_s7 }
   0x3   :  { %3595 = sst [smem:[#allocation27_spill]] %s3584_s8 }
   0x4   :  { %14 = vsyncpa [#allocation5], 0 }
   0x5   :  { %16 = vsyncpa [#allocation5 + $0x1], 0 }
   0x6   :  { %17 = vsyncpa [#allocation8], 0 }
   0x7   :  { %18 = vsyncpa [#allocation11], 0 }
   0x8   :  { %19 = vsyncpa [#allocation14], 0 }
   0x9   :  { %20 = vsyncpa [#allocation6], 0 }
   0xa   :  { %22 = vsyncpa [#allocation6 + $0x1], 0 }
   0xb   :  { %23 = vsyncpa [#allocation18], 0 }
   0xc   :  { %25 = vsyncpa [#allocation18 + $0x1], 0  ;;  %s2905_s27 = smov 0   ;;  %s2907_s28 = smov 0  }
   0xd   :  { %s2909_s29 = smov 0   ;;  %s2911_s30 = smov 0  }
   0xe   :  { %s2913_s9 = smov 0   ;;  %s2915_s10 = smov 0  }
   0xf LB: > { %s3585_s11 = sadd.s32 4294967295, %s2845_s10   ;;  %p1862_p0 = scmp.ge.s32.totalorder %s2845_s10, 1  ;;  %s2845_s10 = sphi %s2915_s10, %s31_s10   ;;  %s2841_s9 = sphi %s2913_s9, %s3620_s9   ;;  %s2837_s30 = sphi %s2911_s30, %s3619_s30   ;;  %s2833_s29 = sphi %s2909_s29, %s3618_s29   ;;  %s2829_s28 = sphi %s2907_s28, %s3617_s28   ;;  %s2825_s27 = sphi %s2905_s27, %s3616_s27  }
  0x10   : > { %p2939_p1 = scmp.eq.s32.totalorder %s3585_s11, 0  ;;  %p256_p2 = scmp.lt.s32.totalorder %s2845_s10, 3 }
  0x11   : > { %s2847_s14 = smov [#allocation7]   ;;  %s2848_s17 = smov [#allocation10]  }
  0x12   : > { %s3596_s12 = scalar_select %p2939_p1, 1, 0 }
  0x13   : > { %p2944_p3 = pnand %p1862_p0, %p256_p2  ;;  %s268_s15 = sshll.u32 %s2847_s14, 4  ;;  %s2948_s15 = int_to_ptr.vmem [resolvable:$true] %s268_s15 }
  0x14   : > { %s292_s18 = sshll.u32 %s2848_s17, 4  ;;  %s2849_s19 = smov [#allocation13]   ;;  %s2959_s18 = int_to_ptr.vmem [resolvable:$true] %s292_s18 }
  0x15   : > { %s3597_s13 = scalar_select %p2944_p3, 1, 0 }
  0x16   : > { %p2355_p4 = pneg %p2944_p3  ;;  %s2961_s20 = sshll.u32 %s2849_s19, 4  ;;  %s317_s20 = int_to_ptr.vmem [resolvable:$true] %s2961_s20 }
  0x17   : > { %s3599_s1 = sld [smem:[#allocation25_spill]] }
  0x18   : > { %p2955_p6 = pnand %p2355_p4, %p2939_p1 }
  0x1a   : > { %p2971_p8 = pneg %p2955_p6 }
  0x1d   : > { %s2521_s23 = scalar_lea.hbm %s3599_s1, 512 }
  0x1e   : > { %p2522_p7 = scmp.ne.s32.totalorder %s3599_s1, %s2521_s23  ;;  %p2528_p11 = scmp.lt.u32.totalorder %s2521_s23, %s3599_s1 }
  0x20   : > { %p2524_p9 = pnand %p2971_p8, %p2522_p7 }
  0x22   : > { %p2525_p10 = pneg %p2524_p9 }
  0x24   : > { %p2530_p12 = pnand %p2528_p11, %p2525_p10 }
  0x26   : > { %2533 = shalt.err (!%p2530_p12)
}
  0x27   : > { %s2534_s19 = scalar_lea.vmem %s2948_s15, 512  ;;  %p2542_p4 = scmp.lt.s32.totalorder %s2948_s15, %s2948_s15 }
  0x28   : > { %p2535_p13 = scmp.ne.s32.totalorder %s2948_s15, %s2534_s19  ;;  %p2543_p5 = scmp.lt.s32.totalorder %s2534_s19, %s2534_s19 }
  0x2a   : > { %p2537_p0 = pnand %p2535_p13, %p2971_p8  ;;  %p2544_p7 = por %p2543_p5, %p2542_p4 }
  0x2c   : > { %p2538_p2 = pneg %p2537_p0 }
  0x2e   : > { %p2545_p9 = pnand %p2544_p7, %p2538_p2 }
  0x30   : > { %2548 = shalt.err (!%p2545_p9)
}
  0x31   : > { %s3591_s21 = smov 128   ;;  %s2851_s22 = smov 8  }
  0x32   : > { %2358 = dma.hbm_to_vmem [thread:$0]  (!%p2955_p6), %s3599_s1, 512, %s2948_s15, [#allocation8], %s3591_s21, %s3591_s21, %s2851_s22  }
  0x33   : > { %s2549_s17 = scalar_lea.hbm %s3579_s3, 512 }
  0x34   : > { %p2550_p5 = scmp.ne.s32.totalorder %s3579_s3, %s2549_s17  ;;  %p2556_p12 = scmp.lt.u32.totalorder %s2549_s17, %s3579_s3 }
  0x36   : > { %p2552_p10 = pnand %p2550_p5, %p2971_p8 }
  0x38   : > { %p2553_p11 = pneg %p2552_p10 }
  0x3a   : > { %p2558_p13 = pnand %p2556_p12, %p2553_p11 }
  0x3c   : > { %2561 = shalt.err (!%p2558_p13)
}
  0x3d   : > { %s2562_s15 = scalar_lea.vmem %s2959_s18, 512  ;;  %p2570_p7 = scmp.lt.s32.totalorder %s2959_s18, %s2959_s18 }
  0x3e   : > { %p2563_p0 = scmp.ne.s32.totalorder %s2959_s18, %s2562_s15  ;;  %p2571_p9 = scmp.lt.s32.totalorder %s2562_s15, %s2562_s15 }
  0x40   : > { %p2565_p2 = pnand %p2563_p0, %p2971_p8  ;;  %p2572_p5 = por %p2571_p9, %p2570_p7 }
  0x42   : > { %p2566_p4 = pneg %p2565_p2 }
  0x44   : > { %p2573_p10 = pnand %p2572_p5, %p2566_p4 }
  0x46   : > { %2576 = shalt.err (!%p2573_p10)
}
  0x47   : > { %2364 = dma.hbm_to_vmem [thread:$0]  (!%p2955_p6), %s3579_s3, 512, %s2959_s18, [#allocation11], %s3591_s21, %s3591_s21, %s2851_s22  }
  0x48   : > { %s2577_s24 = scalar_lea.hbm %s3581_s5, 512 }
  0x49   : > { %p2578_p11 = scmp.ne.s32.totalorder %s3581_s5, %s2577_s24  ;;  %p2584_p0 = scmp.lt.u32.totalorder %s2577_s24, %s3581_s5 }
  0x4b   : > { %p2580_p12 = pnand %p2578_p11, %p2971_p8 }
  0x4d   : > { %p2581_p13 = pneg %p2580_p12 }
  0x4f   : > { %p2586_p2 = pnand %p2584_p0, %p2581_p13 }
  0x51   : > { %2589 = shalt.err (!%p2586_p2)
}
  0x52   : > { %s2590_s15 = scalar_lea.vmem %s317_s20, 512  ;;  %p2598_p5 = scmp.lt.s32.totalorder %s317_s20, %s317_s20 }
  0x53   : > { %p2591_p4 = scmp.ne.s32.totalorder %s317_s20, %s2590_s15  ;;  %p2599_p10 = scmp.lt.s32.totalorder %s2590_s15, %s2590_s15 }
  0x55   : > { %p2593_p7 = pnand %p2591_p4, %p2971_p8  ;;  %p2600_p3 = por %p2599_p10, %p2598_p5 }
  0x57   : > { %p2594_p9 = pneg %p2593_p7 }
  0x59   : > { %p2601_p1 = pnand %p2600_p3, %p2594_p9 }
  0x5b   : > { %2604 = shalt.err (!%p2601_p1)
}
  0x5c   : > { %2370 = dma.hbm_to_vmem [thread:$0]  (!%p2955_p6), %s3581_s5, 512, %s317_s20, [#allocation14], %s3591_s21, %s3591_s21, %s2851_s22  }
  0x5d   : > { %s2852_s8 = smov [#allocation9]   ;;  %s2853_s23 = smov [#allocation12]  }
  0x5e   : > { %s282_s11 = sshll.u32 %s2852_s8, 4  ;;  %s306_s24 = sshll.u32 %s2853_s23, 4  ;;  %s283_s11 = int_to_ptr.vmem [resolvable:$true] %s282_s11  ;;  %s307_s24 = int_to_ptr.vmem [resolvable:$true] %s306_s24 }
  0x5f   : > { %s2605_s17 = scalar_lea.hbm %s3578_s2, 16 }
  0x60   : > { %p2606_p1 = scmp.ne.s32.totalorder %s3578_s2, %s2605_s17  ;;  %p2612_p12 = scmp.lt.u32.totalorder %s2605_s17, %s3578_s2 }
  0x62   : > { %p2608_p3 = pnand %p2606_p1, %p2971_p8 }
  0x64   : > { %p2609_p11 = pneg %p2608_p3 }
  0x66   : > { %p2614_p13 = pnand %p2612_p12, %p2609_p11 }
  0x68   : > { %2617 = shalt.err (!%p2614_p13)
}
  0x69   : > { %s2618_s20 = scalar_lea.vmem %s283_s11, 16  ;;  %s2625_s7 = scalar_lea.vmem %s283_s11, 32 }
  0x6a   : > { %p2619_p0 = scmp.ne.s32.totalorder %s283_s11, %s2618_s20  ;;  %p2626_p7 = scmp.lt.s32.totalorder %s283_s11, %s283_s11 }
  0x6b   : > { %p2627_p9 = scmp.lt.s32.totalorder %s2625_s7, %s2618_s20 }
  0x6c   : > { %p2621_p2 = pnand %p2619_p0, %p2971_p8 }
  0x6d   : > { %p2628_p5 = por %p2627_p9, %p2626_p7 }
  0x6e   : > { %p2622_p4 = pneg %p2621_p2 }
  0x70   : > { %p2629_p10 = pnand %p2628_p5, %p2622_p4 }
  0x72   : > { %2632 = shalt.err (!%p2629_p10)
}
  0x73   : > { %2361 = dma.hbm_to_vmem [thread:$0]  (!%p2955_p6), %s3578_s2, 16, %s283_s11, [#allocation8]  }
  0x74   : > { %s2633_s14 = scalar_lea.hbm %s3580_s4, 16 }
  0x75   : > { %p2634_p1 = scmp.ne.s32.totalorder %s3580_s4, %s2633_s14  ;;  %p2640_p12 = scmp.lt.u32.totalorder %s2633_s14, %s3580_s4 }
  0x77   : > { %p2636_p3 = pnand %p2634_p1, %p2971_p8 }
  0x79   : > { %p2637_p11 = pneg %p2636_p3 }
  0x7b   : > { %p2642_p13 = pnand %p2640_p12, %p2637_p11 }
  0x7d   : > { %2645 = shalt.err (!%p2642_p13)
}
  0x7e   : > { %s2646_s20 = scalar_lea.vmem %s307_s24, 16  ;;  %s2653_s11 = scalar_lea.vmem %s307_s24, 32 }
  0x7f   : > { %p2647_p0 = scmp.ne.s32.totalorder %s307_s24, %s2646_s20  ;;  %p2654_p7 = scmp.lt.s32.totalorder %s307_s24, %s307_s24 }
  0x80   : > { %p2655_p9 = scmp.lt.s32.totalorder %s2653_s11, %s2646_s20 }
  0x81   : > { %p2649_p2 = pnand %p2647_p0, %p2971_p8 }
  0x82   : > { %p2656_p5 = por %p2655_p9, %p2654_p7 }
  0x83   : > { %p2650_p4 = pneg %p2649_p2 }
  0x85   : > { %p2657_p10 = pnand %p2656_p5, %p2650_p4 }
  0x87   : > { %2660 = shalt.err (!%p2657_p10)
}
  0x88   : > { %2367 = dma.hbm_to_vmem [thread:$0]  (!%p2955_p6), %s3580_s4, 16, %s307_s24, [#allocation11]  }
  0x89   : > { %s2854_s23 = smov [#allocation15]   ;;  %s2661_s17 = scalar_lea.hbm %s3582_s6, 16 }
  0x8a   : > { %s330_s1 = sshll.u32 %s2854_s23, 4  ;;  %p2662_p1 = scmp.ne.s32.totalorder %s3582_s6, %s2661_s17  ;;  %s331_s1 = int_to_ptr.vmem [resolvable:$true] %s330_s1 }
  0x8b   : > { %p2668_p12 = scmp.lt.u32.totalorder %s2661_s17, %s3582_s6 }
  0x8c   : > { %p2664_p3 = pnand %p2662_p1, %p2971_p8 }
  0x8e   : > { %p2665_p11 = pneg %p2664_p3 }
  0x90   : > { %p2670_p13 = pnand %p2668_p12, %p2665_p11 }
  0x92   : > { %2673 = shalt.err (!%p2670_p13)
}
  0x93   : > { %s2674_s24 = scalar_lea.vmem %s331_s1, 16  ;;  %s2681_s11 = scalar_lea.vmem %s331_s1, 32 }
  0x94   : > { %p2675_p0 = scmp.ne.s32.totalorder %s331_s1, %s2674_s24  ;;  %p2682_p7 = scmp.lt.s32.totalorder %s331_s1, %s331_s1 }
  0x95   : > { %p2683_p9 = scmp.lt.s32.totalorder %s2681_s11, %s2674_s24 }
  0x96   : > { %p2677_p2 = pnand %p2675_p0, %p2971_p8 }
  0x97   : > { %p2684_p5 = por %p2683_p9, %p2682_p7 }
  0x98   : > { %p2678_p4 = pneg %p2677_p2 }
  0x9a   : > { %p2685_p10 = pnand %p2684_p5, %p2678_p4 }
  0x9c   : > { %2688 = shalt.err (!%p2685_p10)
}
  0x9d   : > { %2373 = dma.hbm_to_vmem [thread:$0]  (!%p2955_p6), %s3582_s6, 16, %s331_s1, [#allocation14]  }
  0x9e   : > { %s1861_s26 = sadd.s32 4294967294, %s2845_s10   ;;  %s43_s23 = sadd.s32 1, %s2841_s9 }
  0x9f   : > { %p45_p8 = scmp.ge.s32.totalorder %s43_s23, 2  ;;  %s50_s16 = sadd.s32 1, %s2833_s29 }
  0xa0   : > { %p57_p1 = scmp.ne.s32.totalorder %s2833_s29, %s2829_s28  ;;  %p58_p3 = scmp.eq.s32.totalorder %s2845_s10, 0 }
  0xa1   : > { %s3622_s23 = smov (%p45_p8, %s43_s23), 0  ;;  %p63_p12 = scmp.ne.s32.totalorder %s2829_s28, %s2825_s27 }
  0xa2   : > { %p3105_p11 = por %p58_p3, %p57_p1  ;;  %s47_s1 = ssub.s32 %s2841_s9, %s3622_s23 }
  0xa3   : > { %s3602_s14 = sadd.s32 4294967295, %s2845_s10   ;;  %p48_p13 = scmp.eq.s32.totalorder %s47_s1, 0 }
  0xa4   : > { %p215_p6 = scmp.eq.s32.totalorder %s3602_s14, 1  ;;  %p3603_p0 = scmp.ne.s32.totalorder %s3596_s12, 0 }
  0xa5   : > { %p221_p7 = scmp.eq.s32.totalorder %s1861_s26, 1  ;;  %p2391_p5 = scmp.lt.s32.totalorder %s2845_s10, 2 }
  0xa6   : > { %p3117_p2 = por %p3603_p0, %p63_p12  ;;  %p3121_p4 = por %p215_p6, %p57_p1 }
  0xa7   : > { %s3126_s15 = scalar_select %p48_p13, %s2833_s29, %s50_s16  }
  0xa8   : > { %s3605_s19 = scalar_select %p3121_p4, 1, 0 }
  0xa9   : > { %p3128_p9 = por %p221_p7, %p63_p12  ;;  %s341_s20 = sand.u32 1, %s2833_s29  }
  0xaa   : > { %s1958_s24 = sshll.u32 %s2841_s9, 11  ;;  %s1870_s11 = sshll.u32 %s341_s20, 7 }
  0xab   : > { %s3606_s18 = scalar_select %p3128_p9, 1, 0 }
  0xac   : > { %s3138_s1 = scalar_lea.hbm %s3576_s0, %s1958_s24  ;;  %s345_s26 = scalar_lea.vmem [#allocation4], %s1870_s11 }
  0xad   : > { %s352_s16 = sshll.u32 %s345_s26, 4  ;;  %p3142_p10 = pnand %p2391_p5, %p3105_p11  ;;  %s3146_s16 = int_to_ptr.vmem [resolvable:$true] %s352_s16 }
  0xae   : > { %s3148_s21 = scalar_lea.sflag [#allocation5], %s341_s20  ;;  %s2689_s7 = scalar_lea.hbm %s3138_s1, 2048 }
  0xaf   : > { %p2690_p8 = scmp.ne.s32.totalorder %s3138_s1, %s2689_s7  ;;  %p2691_p1 = pneg %p3142_p10 }
  0xb0   : > { %s2694_s11 = scalar_lea.hbm %s3576_s0, 4096  ;;  %p2695_p11 = scmp.lt.u32.totalorder %s3138_s1, %s3576_s0 }
  0xb1   : > { %p2692_p3 = pnand %p2691_p1, %p2690_p8  ;;  %p2696_p6 = scmp.lt.u32.totalorder %s2694_s11, %s2689_s7 }
  0xb2   : > { %p2698_p0 = scmp.lt.u32.totalorder %s2689_s7, %s3138_s1 }
  0xb3   : > { %p2693_p12 = pneg %p2692_p3  ;;  %p2697_p13 = por %p2696_p6, %p2695_p11 }
  0xb5   : > { %p2699_p7 = por %p2698_p0, %p2697_p13 }
  0xb7   : > { %p2700_p5 = pnand %p2699_p7, %p2693_p12 }
  0xb9   : > { %2703 = shalt.err (!%p2700_p5)
}
  0xba   : > { %s2704_s20 = scalar_lea.vmem %s3146_s16, 2048  ;;  %s2855_s24 = smov [#allocation4]  }
  0xbb   : > { %p2705_p8 = scmp.ne.s32.totalorder %s3146_s16, %s2704_s20  ;;  %s2709_s25 = sshll.u32 %s2855_s24, 4  ;;  %s2710_s25 = int_to_ptr.vmem [resolvable:$false] %s2709_s25 }
  0xbc   : > { %s2711_s8 = scalar_lea.vmem %s2710_s25, 4096  ;;  %p2712_p4 = scmp.lt.s32.totalorder %s3146_s16, %s2710_s25 }
  0xbd   : > { %p2707_p3 = pnand %p2705_p8, %p2691_p1  ;;  %p2713_p11 = scmp.lt.s32.totalorder %s2711_s8, %s2704_s20 }
  0xbf   : > { %p2708_p9 = pneg %p2707_p3  ;;  %p2714_p6 = por %p2713_p11, %p2712_p4 }
  0xc1   : > { %p2715_p13 = pnand %p2714_p6, %p2708_p9 }
  0xc3   : > { %2718 = shalt.err (!%p2715_p13)
}
  0xc4   : > { %s3608_s7 = smov 128   ;;  %p3609_p1 = scmp.ne.s32.totalorder %s3597_s13, 0 }
  0xc5   : > { %2377 = dma.hbm_to_vmem [thread:$0]  (!%p3142_p10), %s3138_s1, 2048, %s3146_s16, %s3148_s21, %s3608_s7, %s3608_s7, %s2851_s22  }
  0xc6   : > { %364 = sbr.rel (%p3609_p1) target bundleno = 1398 (0x576), region = 48  ;;  %s3182_s11 = sand.u32 (!%p3609_p1), 1, %s2829_s28  }
  0xc7   : > { %s3185_s26 = sshll.u32 (!%p3609_p1), %s3182_s11, 7  ;;  %s367_s14 = scalar_lea.sflag (!%p3609_p1), [#allocation5], %s3182_s11 }
  0xc8   : > { %s3189_s20 = scalar_lea.vmem (!%p3609_p1), [#allocation4], %s3185_s26 }
  0xcd   : > { %2800 = dma.done.wait (%p3117_p2), %s367_s14, 2048  }
  0xce   : > { %2802 = vsyncadd (%p3117_p2), %s367_s14, 4294965248  ;;  %p3610_p4 = scmp.ne.s32.totalorder %s3596_s12, 0 }
  0xd0   : > { %2804 = dma.done.wait (%p3610_p4), [#allocation8], 528  }
  0xd1   : > { %2806 = vsyncadd (%p3610_p4), [#allocation8], 4294966768 }
  0xd2   : > { %2808 = dma.done.wait (%p3610_p4), [#allocation11], 528  }
  0xd3   : > { %2810 = vsyncadd (%p3610_p4), [#allocation11], 4294966768 }
  0xd4   : > { %2812 = dma.done.wait (%p3610_p4), [#allocation14], 528  }
  0xd5   : > { %2814 = vsyncadd (%p3610_p4), [#allocation14], 4294966768  ;;  %vm465_vm0 = vcmask 261120   ;;  %v454_v0 = vld [vmem:[#allocation10] sm:$0xff]  ;;  %v455_v1 = vld [vmem:[#allocation10 + $0x8] sm:$0xff]  ;;  %s3426_s12 = scalar_lea.vmem [#allocation17], %s3185_s26 }
  0xd6   : > { %v456_v2 = vld [vmem:[#allocation10 + $0x10] sm:$0xff]  ;;  %v2257_v3 = vpack.c.bf16 %v455_v1, %v454_v0  ;;  %v457_v4 = vld [vmem:[#allocation10 + $0x18] sm:$0xff]  ;;  %v886_v9 = vld [vmem:[#allocation7 + $0x8] sm:$0xff]  ;;  %s1959_s13 = sshll.u32 %s2837_s30, 11  ;;  %s3611_s17 = sld [smem:[#allocation27_spill]] }
  0xd7   : > { %v438_v5 = vld [vmem:[%s3189_s20] sm:$0xff]  ;;  %v2261_v6 = vpack.c.bf16 %v457_v4, %v456_v2  ;;  %v887_v10 = vld [vmem:[#allocation7 + $0x10] sm:$0xff]  ;;  %v888_v11 = vld [vmem:[#allocation7 + $0x18] sm:$0xff]  ;;  %s1682_s16 = sshll.u32 %s3426_s12, 4  ;;  %s1649_s24 = scalar_lea.sflag [#allocation18], %s3182_s11  ;;  %s3468_s16 = int_to_ptr.vmem [resolvable:$true] %s1682_s16 }
  0xd8   : > { %2081 = vmatprep.mubr.msk.f32.mxu0 %vm465_vm0, %v438_v5  ;;  %2258 = vmatprep.subr.bf16.mxu0 %v2257_v3  ;;  %v3210_v7 = vld [vmem:[%s3189_s20 + $0x40] sm:$0xff]  ;;  %v439_v12 = vld [vmem:[%s3189_s20 + $0x8] sm:$0xff]  ;;  %v440_v15 = vld [vmem:[%s3189_s20 + $0x10] sm:$0xff]  ;;  %v2277_v17 = vpack.c.bf16 %v888_v11, %v887_v10  ;;  %s2719_s25 = scalar_lea.vmem %s3468_s16, 2048  ;;  %p3612_p9 = scmp.ne.s32.totalorder %s3605_s19, 0 }
  0xd9   : > { %2321 = vmatprep.subr.bf16.mxu1 %v2257_v3  ;;  %2260 = vmatpush3.bf16.msra.mxu0 %v2257_v3  ;;  %v885_v8 = vld [vmem:[#allocation7] sm:$0xff]  ;;  %v3216_v13 = vld [vmem:[%s3189_s20 + $0x48] sm:$0xff]  ;;  %v3220_v16 = vld [vmem:[%s3189_s20 + $0x50] sm:$0xff]  ;;  %p2720_p2 = scmp.ne.s32.totalorder %s3468_s16, %s2719_s25  ;;  %s2856_s8 = smov [#allocation17]  }
  0xda   : > { %2323 = vmatpush3.bf16.msra.mxu1 %v2257_v3  ;;  %2262 = vmatprep.subr.bf16.mxu0 %v2261_v6  ;;  %v2273_v14 = vpack.c.bf16 %v886_v9, %v885_v8  ;;  %v441_v18 = vld [vmem:[%s3189_s20 + $0x18] sm:$0xff]  ;;  %v442_v20 = vld [vmem:[%s3189_s20 + $0x20] sm:$0xff]  ;;  %v443_v22 = vld [vmem:[%s3189_s20 + $0x28] sm:$0xff]  ;;  %s2723_s7 = sshll.u32 %s2856_s8, 4  ;;  %s2724_s7 = int_to_ptr.vmem [resolvable:$false] %s2723_s7 }
  0xdb   : > { %2322 = vmatprep.subr.bf16.mxu1 %v2261_v6  ;;  %2093 = vmatprep.mubr.msk.f32.mxu1 %vm465_vm0, %v3210_v7  ;;  %v449_v19 = vld [vmem:[%s3189_s20 + $0x58] sm:$0xff]  ;;  %v450_v21 = vld [vmem:[%s3189_s20 + $0x60] sm:$0xff]  ;;  %v451_v23 = vld [vmem:[%s3189_s20 + $0x68] sm:$0xff]  ;;  %p2721_p10 = pnand %p2720_p2, %p3612_p9  ;;  %s2725_s14 = scalar_lea.vmem %s2724_s7, 4096 }
  0xdc   : > { %v444_v24 = vld [vmem:[%s3189_s20 + $0x30] sm:$0xff]  ;;  %v445_v26 = vld [vmem:[%s3189_s20 + $0x38] sm:$0xff]  ;;  %v659_v28 = vld [vmem:[#allocation13] sm:$0xff]  ;;  %s3465_s1 = scalar_lea.hbm %s3611_s17, %s1959_s13  ;;  %p2726_p0 = scmp.lt.s32.totalorder %s3468_s16, %s2724_s7 }
  0xdd   : > { %2264 = vmatpush3.bf16.msra.mxu0 %v2261_v6  ;;  %v452_v25 = vld [vmem:[%s3189_s20 + $0x70] sm:$0xff]  ;;  %v453_v27 = vld [vmem:[%s3189_s20 + $0x78] sm:$0xff]  ;;  %v3286_v34 = vld [vmem:[#allocation12] ss:$0 sm:$0xff]  ;;  %p2722_p12 = pneg %p2721_p10  ;;  %p2727_p7 = scmp.lt.s32.totalorder %s2725_s14, %s2719_s25 }
  0xde   : > { %2324 = vmatpush3.bf16.msra.mxu1 %v2261_v6  ;;  %2274 = vmatprep.subr.bf16.mxu0 %v2273_v14  ;;  %v660_v29 = vld [vmem:[#allocation13 + $0x8] sm:$0xff]  ;;  %v661_v30 = vld [vmem:[#allocation13 + $0x10] sm:$0xff]  ;;  %v662_v32 = vld [vmem:[#allocation13 + $0x18] sm:$0xff] }
  0xdf   : > { %v2265_v31 = vpack.c.bf16 %v660_v29, %v659_v28  ;;  %v2269_v33 = vpack.c.bf16 %v662_v32, %v661_v30  ;;  %v1917_v57 = vld [vmem:[#allocation9] ss:$0 sm:$0xff]  ;;  %p2728_p5 = por %p2727_p7, %p2726_p0 }
  0xe0   : > { %2082 = vmatmul.mubr.msk.f32.vlgmr.msra.gmra.mrb[0].mxu0 %vm465_vm0, %v439_v12 }
  0xe1   : > { %2094 = vmatmul.mubr.msk.f32.vlgmr.msra.gmra.mrb[0].mxu1 %vm465_vm0, %v3216_v13  ;;  %2084 = vmatprep.mubr.msk.f32.mxu0 %vm465_vm0, %v440_v15  ;;  %p2729_p8 = pnand %p2728_p5, %p2722_p12 }
  0xe2   : > { %2096 = vmatprep.mubr.msk.f32.mxu1 %vm465_vm0, %v3220_v16  ;;  %2276 = vmatpush3.bf16.msra.mxu0 %v2273_v14 }
  0xe3   : > { %2278 = vmatprep.subr.bf16.mxu0 %v2277_v17  ;;  %2266 = vmatprep.subr.bf16.mxu1 %v2265_v31 }
  0xe4   : > { %2085 = vmatmul.mubr.msk.f32.gmra.mrb[2].mxu0 %vm465_vm0, %v441_v18  ;;  %2268 = vmatpush3.bf16.msra.mxu1 %v2265_v31 }
  0xe5   : > { %2097 = vmatmul.mubr.msk.f32.gmra.mrb[2].mxu1 %vm465_vm0, %v449_v19  ;;  %2087 = vmatprep.mubr.msk.f32.mxu0 %vm465_vm0, %v442_v20 }
  0xe6   : > { %2099 = vmatprep.mubr.msk.f32.mxu1 %vm465_vm0, %v450_v21  ;;  %2280 = vmatpush3.bf16.msra.mxu0 %v2277_v17 }
  0xe7   : > { %2270 = vmatprep.subr.bf16.mxu1 %v2269_v33 }
  0xe8   : > { %2088 = vmatmul.mubr.msk.f32.gmra.mrb[4].mxu0 %vm465_vm0, %v443_v22  ;;  %2272 = vmatpush3.bf16.msra.mxu1 %v2269_v33 }
  0xe9   : > { %2100 = vmatmul.mubr.msk.f32.gmra.mrb[4].mxu1 %vm465_vm0, %v451_v23  ;;  %2090 = vmatprep.mubr.msk.f32.mxu0 %vm465_vm0, %v444_v24 }
  0xea   : > { %2102 = vmatprep.mubr.msk.f32.mxu1 %vm465_vm0, %v452_v25 }
  0xec   : > { %2091 = vmatmul.mubr.msk.f32.gmra.mrb[6].mxu0 %vm465_vm0, %v445_v26 }
  0xed   : > { %2103 = vmatmul.mubr.msk.f32.gmra.mrb[6].mxu1 %vm465_vm0, %v453_v27  ;;  %2145 = vmatprep.mubr.msk.f32.mxu0 %vm465_vm0, %v438_v5 }
  0xee   : > { %2113 = vmatprep.mubr.msk.f32.mxu1 %vm465_vm0, %v438_v5 }
  0xf0   : > { %2146 = vmatmul.mubr.msk.f32.vlgmr.msra.gmra.mrb[8].mxu0 %vm465_vm0, %v439_v12 }
  0xf1   : > { %2148 = vmatprep.mubr.msk.f32.mxu0 %vm465_vm0, %v440_v15  ;;  %2114 = vmatmul.mubr.msk.f32.vlgmr.msra.gmra.mrb[8].mxu1 %vm465_vm0, %v439_v12 }
  0xf2   : > { %2116 = vmatprep.mubr.msk.f32.mxu1 %vm465_vm0, %v440_v15 }
  0xf4   : > { %2149 = vmatmul.mubr.msk.f32.gmra.mrb[10].mxu0 %vm465_vm0, %v441_v18 }
  0xf5   : > { %2151 = vmatprep.mubr.msk.f32.mxu0 %vm465_vm0, %v442_v20  ;;  %2117 = vmatmul.mubr.msk.f32.gmra.mrb[10].mxu1 %vm465_vm0, %v441_v18 }
  0xf6   : > { %2119 = vmatprep.mubr.msk.f32.mxu1 %vm465_vm0, %v442_v20 }
  0xf8   : > { %2152 = vmatmul.mubr.msk.f32.gmra.mrb[12].mxu0 %vm465_vm0, %v443_v22 }
  0xf9   : > { %2154 = vmatprep.mubr.msk.f32.mxu0 %vm465_vm0, %v444_v24  ;;  %2120 = vmatmul.mubr.msk.f32.gmra.mrb[12].mxu1 %vm465_vm0, %v443_v22 }
  0xfa   : > { %2122 = vmatprep.mubr.msk.f32.mxu1 %vm465_vm0, %v444_v24 }
  0xfc   : > { %2155 = vmatmul.mubr.msk.f32.gmra.mrb[14].mxu0 %vm465_vm0, %v445_v26 }
  0xfd   : > { %2157 = vmatprep.mubr.msk.f32.mxu0 %vm465_vm0, %v3210_v7  ;;  %2123 = vmatmul.mubr.msk.f32.gmra.mrb[14].mxu1 %vm465_vm0, %v445_v26 }
  0xfe   : > { %2125 = vmatprep.mubr.msk.f32.mxu1 %vm465_vm0, %v3210_v7 }
 0x100   : > { %2158 = vmatmul.mubr.msk.f32.gmra.mrb[16].mxu0 %vm465_vm0, %v3216_v13 }
 0x101   : > { %2160 = vmatprep.mubr.msk.f32.mxu0 %vm465_vm0, %v3220_v16  ;;  %2126 = vmatmul.mubr.msk.f32.gmra.mrb[16].mxu1 %vm465_vm0, %v3216_v13 }
 0x102   : > { %2128 = vmatprep.mubr.msk.f32.mxu1 %vm465_vm0, %v3220_v16 }
 0x104   : > { %2161 = vmatmul.mubr.msk.f32.gmra.mrb[18].mxu0 %vm465_vm0, %v449_v19 }
 0x105   : > { %2163 = vmatprep.mubr.msk.f32.mxu0 %vm465_vm0, %v450_v21  ;;  %2129 = vmatmul.mubr.msk.f32.gmra.mrb[18].mxu1 %vm465_vm0, %v449_v19 }
 0x106   : > { %2131 = vmatprep.mubr.msk.f32.mxu1 %vm465_vm0, %v450_v21 }
 0x108   : > { %2164 = vmatmul.mubr.msk.f32.gmra.mrb[20].mxu0 %vm465_vm0, %v451_v23 }
 0x109   : > { %2166 = vmatprep.mubr.msk.f32.mxu0 %vm465_vm0, %v452_v25  ;;  %2132 = vmatmul.mubr.msk.f32.gmra.mrb[20].mxu1 %vm465_vm0, %v451_v23 }
 0x10a   : > { %2134 = vmatprep.mubr.msk.f32.mxu1 %vm465_vm0, %v452_v25 }
 0x10c   : > { %2167 = vmatmul.mubr.msk.f32.gmra.mrb[22].mxu0 %vm465_vm0, %v453_v27 }
 0x10d   : > { %2135 = vmatmul.mubr.msk.f32.gmra.mrb[22].mxu1 %vm465_vm0, %v453_v27 }
 0x1b3   : > { %v2083_v35 = vpop.f32.mrb[0].mxu0 }
 0x1b4   : > { %v2095_v36 = vpop.f32.mrb[0].mxu1  ;;  %v580_v37 = vpop.f32.mrb[1].mxu0  ;;  %v586_v44 = vadd.f32 %v2083_v35, %v3286_v34 }
 0x1b5   : > { %v620_v38 = vpop.f32.mrb[1].mxu1  ;;  %v581_v39 = vadd.f32 %v3286_v34, %v580_v37  ;;  %v626_v17 = vadd.f32 %v2095_v36, %v3286_v34 }
 0x1b6   : > { %v621_v9 = vadd.f32 %v3286_v34, %v620_v38 }
 0x1b7   : > { %815 = vxpose.xlu0.b32.start [1/16] (narrow) %v581_v39, 32  ;;  %v2086_v40 = vpop.f32.mrb[2].mxu0 }
 0x1b8   : > { %v2098_v41 = vpop.f32.mrb[2].mxu1  ;;  %v590_v42 = vpop.f32.mrb[3].mxu0  ;;  %v596_v54 = vadd.f32 %v2086_v40, %v3286_v34 }
 0x1b9   : > { %v630_v43 = vpop.f32.mrb[3].mxu1  ;;  %v591_v45 = vadd.f32 %v3286_v34, %v590_v42  ;;  %v636_v27 = vadd.f32 %v2098_v41, %v3286_v34 }
 0x1ba   : > { %v631_v19 = vadd.f32 %v3286_v34, %v630_v43 }
 0x1bb   : > { %816 = vxpose.xlu0.b32.cont [2/16] (narrow) %v586_v44, 32  ;;  %v2089_v46 = vpop.f32.mrb[4].mxu0 }
 0x1bc   : > { %v2101_v47 = vpop.f32.mrb[4].mxu1  ;;  %v600_v48 = vpop.f32.mrb[5].mxu0  ;;  %v606_v61 = vadd.f32 %v2089_v46, %v3286_v34 }
 0x1bd   : > { %v640_v49 = vpop.f32.mrb[5].mxu1  ;;  %v601_v55 = vadd.f32 %v3286_v34, %v600_v48  ;;  %v646_v33 = vadd.f32 %v2101_v47, %v3286_v34 }
 0x1be   : > { %v641_v29 = vadd.f32 %v3286_v34, %v640_v49 }
 0x1bf   : > { %817 = vxpose.xlu0.b32.cont [3/16] (narrow) %v591_v45, 32  ;;  %v2092_v50 = vpop.f32.mrb[6].mxu0 }
 0x1c0   : > { %v2104_v51 = vpop.f32.mrb[6].mxu1  ;;  %v610_v52 = vpop.f32.mrb[7].mxu0  ;;  %v616_v7 = vadd.f32 %v2092_v50, %v3286_v34 }
 0x1c1   : > { %v650_v53 = vpop.f32.mrb[7].mxu1  ;;  %v611_v63 = vadd.f32 %v3286_v34, %v610_v52  ;;  %v656_v36 = vadd.f32 %v2104_v51, %v3286_v34 }
 0x1c2   : > { %v651_v35 = vadd.f32 %v3286_v34, %v650_v53  ;;  %v1900_v34 = vld [vmem:[#allocation15] ss:$0 sm:$0xff] }
 0x1c3   : > { %818 = vxpose.xlu0.b32.cont [4/16] (narrow) %v596_v54, 32  ;;  %v2147_v56 = vpop.f32.mrb[8].mxu0 }
 0x1c4   : > { %v3293_v58 = vadd.f32 %v2147_v56, %v1917_v57  ;;  %v1011_v59 = vpop.f32.mrb[9].mxu0  ;;  %v2115_v43 = vpop.f32.mrb[8].mxu1 }
 0x1c5   : > { %v1012_v60 = vadd.f32 %v1917_v57, %v1011_v59  ;;  %v742_v44 = vadd.f32 %v2115_v43, %v1900_v34  ;;  %v736_v45 = vpop.f32.mrb[9].mxu1 }
 0x1c6   : > { %v737_v46 = vadd.f32 %v1900_v34, %v736_v45 }
 0x1c7   : > { %819 = vxpose.xlu0.b32.cont [5/16] (narrow) %v601_v55, 32  ;;  %2177 = vmatprep.mubr.msk.f32.mxu1 %vm465_vm0, %v1012_v60  ;;  %v2150_v62 = vpop.f32.mrb[10].mxu0 }
 0x1c8   : > { %v1027_v0 = vadd.f32 %v2150_v62, %v1917_v57  ;;  %v1021_v1 = vpop.f32.mrb[11].mxu0  ;;  %v2289_v47 = vpack.c.bf16 %v742_v44, %v737_v46  ;;  %v2118_v48 = vpop.f32.mrb[10].mxu1 }
 0x1c9   : > { %v1022_v2 = vadd.f32 %v1917_v57, %v1021_v1  ;;  %v752_v49 = vadd.f32 %v2118_v48, %v1900_v34  ;;  %v746_v50 = vpop.f32.mrb[11].mxu1 }
 0x1ca   : > { %v747_v51 = vadd.f32 %v1900_v34, %v746_v50  ;;  %2290 = vmatprep.subr.bf16.mxu0 %v2289_v47 }
 0x1cb   : > { %820 = vxpose.xlu0.b32.cont [6/16] (narrow) %v606_v61, 32  ;;  %v2153_v3 = vpop.f32.mrb[12].mxu0  ;;  %2292 = vmatpush3.bf16.msra.mxu0 %v2289_v47 }
 0x1cc   : > { %v1037_v4 = vadd.f32 %v2153_v3, %v1917_v57  ;;  %v1031_v5 = vpop.f32.mrb[13].mxu0  ;;  %v2293_v52 = vpack.c.bf16 %v752_v49, %v747_v51  ;;  %v2121_v53 = vpop.f32.mrb[12].mxu1 }
 0x1cd   : > { %v1032_v6 = vadd.f32 %v1917_v57, %v1031_v5  ;;  %v762_v54 = vadd.f32 %v2121_v53, %v1900_v34  ;;  %v756_v55 = vpop.f32.mrb[13].mxu1 }
 0x1ce   : > { %v757_v56 = vadd.f32 %v1900_v34, %v756_v55  ;;  %2294 = vmatprep.subr.bf16.mxu0 %v2293_v52 }
 0x1cf   : > { %821 = vxpose.xlu0.b32.cont [7/16] (narrow) %v611_v63, 32  ;;  %v2156_v8 = vpop.f32.mrb[14].mxu0  ;;  %2296 = vmatpush3.bf16.msra.mxu0 %v2293_v52 }
 0x1d0   : > { %v1047_v10 = vadd.f32 %v2156_v8, %v1917_v57  ;;  %v1041_v11 = vpop.f32.mrb[15].mxu0 }
 0x1d1   : > { %v1042_v12 = vadd.f32 %v1917_v57, %v1041_v11 }
 0x1d3   : > { %822 = vxpose.xlu0.b32.cont [8/16] (narrow) %v616_v7, 32  ;;  %v2159_v13 = vpop.f32.mrb[16].mxu0 }
 0x1d4   : > { %v1057_v14 = vadd.f32 %v2159_v13, %v1917_v57  ;;  %v1051_v15 = vpop.f32.mrb[17].mxu0 }
 0x1d5   : > { %v1052_v16 = vadd.f32 %v1917_v57, %v1051_v15 }
 0x1d7   : > { %823 = vxpose.xlu0.b32.cont [9/16] (narrow) %v621_v9, 32  ;;  %v2162_v18 = vpop.f32.mrb[18].mxu0 }
 0x1d8   : > { %v3302_v20 = vadd.f32 %v2162_v18, %v1917_v57  ;;  %v1061_v21 = vpop.f32.mrb[19].mxu0 }
 0x1d9   : > { %v1062_v22 = vadd.f32 %v1917_v57, %v1061_v21 }
 0x1db   : > { %824 = vxpose.xlu0.b32.cont [10/16] (narrow) %v626_v17, 32  ;;  %v2165_v23 = vpop.f32.mrb[20].mxu0 }
 0x1dc   : > { %v3304_v24 = vadd.f32 %v2165_v23, %v1917_v57  ;;  %v1071_v25 = vpop.f32.mrb[21].mxu0 }
 0x1dd   : > { %v1072_v26 = vadd.f32 %v1917_v57, %v1071_v25 }
 0x1df   : > { %825 = vxpose.xlu0.b32.cont [11/16] (narrow) %v631_v19, 32  ;;  %v2168_v28 = vpop.f32.mrb[22].mxu0  ;;  %v1287_v19 = vlaneseq }
 0x1e0   : > { %v3308_v30 = vadd.f32 %v2168_v28, %v1917_v57  ;;  %v1081_v31 = vpop.f32.mrb[23].mxu0 }
 0x1e1   : > { %v1082_v32 = vadd.f32 %v1917_v57, %v1081_v31  ;;  %v2297_v57 = vpack.c.bf16 %v762_v54, %v757_v56 }
 0x1e3   : > { %826 = vxpose.xlu0.b32.cont [12/16] (narrow) %v636_v27, 32  ;;  %2298 = vmatprep.subr.bf16.mxu0 %v2297_v57 }
 0x1e4   : > { %2300 = vmatpush3.bf16.msra.mxu0 %v2297_v57 }
 0x1e7   : > { %827 = vxpose.xlu0.b32.cont [13/16] (narrow) %v641_v29, 32 }
 0x1eb   : > { %828 = vxpose.xlu0.b32.cont [14/16] (narrow) %v646_v33, 32 }
 0x1ef   : > { %829 = vxpose.xlu0.b32.cont [15/16] (narrow) %v651_v35, 32 }
 0x1f3   : > { %830 = vxpose.xlu0.b32.end [16/16] (narrow) %v656_v36, 32 }
 0x237   : > { %v831_v37 = vpop.trf.xlu0 }
 0x23b   : > { %v832_v38 = vpop.trf.xlu0 }
 0x23c   : > { %v2281_v39 = vpack.c.bf16 %v832_v38, %v831_v37 }
 0x23e   : > { %2282 = vmatprep.subr.bf16.mxu1 %v2281_v39 }
 0x23f   : > { %2284 = vmatpush3.bf16.msra.mxu1 %v2281_v39  ;;  %v833_v40 = vpop.trf.xlu0 }
 0x243   : > { %v834_v41 = vpop.trf.xlu0 }
 0x244   : > { %v2285_v42 = vpack.c.bf16 %v834_v41, %v833_v40 }
 0x246   : > { %2286 = vmatprep.subr.bf16.mxu1 %v2285_v42 }
 0x247   : > { %2288 = vmatpush3.bf16.msra.mxu1 %v2285_v42 }
 0x24a   : > { %2178 = vmatmul.mubr.msk.f32.vlgmr.msra.gmra.mrb[24].mxu1 %vm465_vm0, %v3293_v58  ;;  %v2124_v58 = vpop.f32.mrb[14].mxu1 }
 0x24b   : > { %2180 = vmatprep.mubr.msk.f32.mxu1 %vm465_vm0, %v1022_v2  ;;  %v772_v59 = vadd.f32 %v2124_v58, %v1900_v34  ;;  %v766_v60 = vpop.f32.mrb[15].mxu1 }
 0x24c   : > { %v767_v61 = vadd.f32 %v1900_v34, %v766_v60  ;;  %v2127_v63 = vpop.f32.mrb[16].mxu1 }
 0x24d   : > { %v776_v1 = vpop.f32.mrb[17].mxu1 }
 0x24e   : > { %2181 = vmatmul.mubr.msk.f32.gmra.mrb[26].mxu1 %vm465_vm0, %v1027_v0  ;;  %v2301_v62 = vpack.c.bf16 %v772_v59, %v767_v61  ;;  %v782_v0 = vadd.f32 %v2127_v63, %v1900_v34  ;;  %v777_v2 = vadd.f32 %v1900_v34, %v776_v1 }
 0x24f   : > { %2183 = vmatprep.mubr.msk.f32.mxu1 %vm465_vm0, %v1032_v6 }
 0x250   : > { %2302 = vmatprep.subr.bf16.mxu0 %v2301_v62  ;;  %v2305_v3 = vpack.c.bf16 %v782_v0, %v777_v2 }
 0x251   : > { %2304 = vmatpush3.bf16.msra.mxu0 %v2301_v62 }
 0x252   : > { %2184 = vmatmul.mubr.msk.f32.gmra.mrb[28].mxu1 %vm465_vm0, %v1037_v4  ;;  %v2130_v4 = vpop.f32.mrb[18].mxu1  ;;  %2306 = vmatprep.subr.bf16.mxu0 %v2305_v3 }
 0x253   : > { %2186 = vmatprep.mubr.msk.f32.mxu1 %vm465_vm0, %v1042_v12  ;;  %v792_v5 = vadd.f32 %v2130_v4, %v1900_v34  ;;  %v786_v6 = vpop.f32.mrb[19].mxu1 }
 0x254   : > { %v787_v7 = vadd.f32 %v1900_v34, %v786_v6  ;;  %v2133_v9 = vpop.f32.mrb[20].mxu1 }
 0x255   : > { %2308 = vmatpush3.bf16.msra.mxu0 %v2305_v3  ;;  %v796_v11 = vpop.f32.mrb[21].mxu1 }
 0x256   : > { %2187 = vmatmul.mubr.msk.f32.gmra.mrb[30].mxu1 %vm465_vm0, %v1047_v10  ;;  %v2309_v8 = vpack.c.bf16 %v792_v5, %v787_v7  ;;  %v802_v10 = vadd.f32 %v2133_v9, %v1900_v34  ;;  %v797_v12 = vadd.f32 %v1900_v34, %v796_v11 }
 0x257   : > { %2189 = vmatprep.mubr.msk.f32.mxu1 %vm465_vm0, %v1052_v16 }
 0x258   : > { %2310 = vmatprep.subr.bf16.mxu0 %v2309_v8  ;;  %v2313_v13 = vpack.c.bf16 %v802_v10, %v797_v12 }
 0x259   : > { %2312 = vmatpush3.bf16.msra.mxu0 %v2309_v8 }
 0x25a   : > { %2190 = vmatmul.mubr.msk.f32.gmra.mrb[32].mxu1 %vm465_vm0, %v1057_v14  ;;  %v2136_v14 = vpop.f32.mrb[22].mxu1  ;;  %2314 = vmatprep.subr.bf16.mxu0 %v2313_v13 }
 0x25b   : > { %2192 = vmatprep.mubr.msk.f32.mxu1 %vm465_vm0, %v1062_v22  ;;  %v812_v15 = vadd.f32 %v2136_v14, %v1900_v34  ;;  %v806_v16 = vpop.f32.mrb[23].mxu1 }
 0x25c   : > { %v807_v17 = vadd.f32 %v1900_v34, %v806_v16 }
 0x25d   : > { %2316 = vmatpush3.bf16.msra.mxu0 %v2313_v13 }
 0x25e   : > { %2193 = vmatmul.mubr.msk.f32.gmra.mrb[34].mxu1 %vm465_vm0, %v3302_v20  ;;  %v2317_v18 = vpack.c.bf16 %v812_v15, %v807_v17  ;;  %v1288_v20 = vand.u32 127, %v1287_v19 }
 0x25f   : > { %2195 = vmatprep.mubr.msk.f32.mxu1 %vm465_vm0, %v1072_v26 }
 0x260   : > { %2318 = vmatprep.subr.bf16.mxu0 %v2317_v18  ;;  %vm1289_vm1 = vcmp.lt.s32.totalorder %v1288_v20, 8 }
 0x261   : > { %2320 = vmatpush3.bf16.msra.mxu0 %v2317_v18 }
 0x262   : > { %2196 = vmatmul.mubr.msk.f32.gmra.mrb[36].mxu1 %vm465_vm0, %v3304_v24 }
 0x263   : > { %2198 = vmatprep.mubr.msk.f32.mxu1 %vm465_vm0, %v1082_v32 }
 0x266   : > { %2199 = vmatmul.mubr.msk.f32.gmra.mrb[38].mxu1 %vm465_vm0, %v3308_v30 }
 0x31d   : > { %v2179_v21 = vpop.f32.mrb[24].mxu1 }
 0x31e   : > { %v1291_v22 = vsel %vm1289_vm1, %v2179_v21, -inf  ;;  %v1208_v23 = vpop.f32.mrb[25].mxu1 }
 0x31f   : > { %1308 = vmax.xlane.f32.xlu1 %v1291_v22  ;;  %v1290_v25 = vsel %vm1289_vm1, %v1208_v23, -inf }
 0x321   : > { %v2182_v24 = vpop.f32.mrb[26].mxu1 }
 0x322   : > { %v1218_v26 = vpop.f32.mrb[27].mxu1  ;;  %v1293_v28 = vsel %vm1289_vm1, %v2182_v24, -inf }
 0x323   : > { %1306 = vmax.xlane.f32.xlu1 %v1290_v25  ;;  %v1292_v31 = vsel %vm1289_vm1, %v1218_v26, -inf }
 0x325   : > { %v2185_v27 = vpop.f32.mrb[28].mxu1 }
 0x326   : > { %v1228_v29 = vpop.f32.mrb[29].mxu1  ;;  %v1295_v35 = vsel %vm1289_vm1, %v2185_v27, -inf }
 0x327   : > { %1312 = vmax.xlane.f32.xlu1 %v1293_v28  ;;  %v1294_v38 = vsel %vm1289_vm1, %v1228_v29, -inf }
 0x329   : > { %v2188_v30 = vpop.f32.mrb[30].mxu1 }
 0x32a   : > { %v1238_v32 = vpop.f32.mrb[31].mxu1  ;;  %v1297_v41 = vsel %vm1289_vm1, %v2188_v30, -inf }
 0x32b   : > { %1310 = vmax.xlane.f32.xlu1 %v1292_v31  ;;  %v1296_v43 = vsel %vm1289_vm1, %v1238_v32, -inf }
 0x32d   : > { %v2191_v33 = vpop.f32.mrb[32].mxu1 }
 0x32e   : > { %v1248_v36 = vpop.f32.mrb[33].mxu1  ;;  %v1299_v45 = vsel %vm1289_vm1, %v2191_v33, -inf }
 0x32f   : > { %1316 = vmax.xlane.f32.xlu1 %v1295_v35  ;;  %v3342_v46 = vsel %vm1289_vm1, %v1248_v36, -inf }
 0x331   : > { %v2194_v37 = vpop.f32.mrb[34].mxu1 }
 0x332   : > { %v1258_v39 = vpop.f32.mrb[35].mxu1  ;;  %v3346_v47 = vsel %vm1289_vm1, %v2194_v37, -inf }
 0x333   : > { %1314 = vmax.xlane.f32.xlu1 %v1294_v38  ;;  %v3350_v48 = vsel %vm1289_vm1, %v1258_v39, -inf }
 0x335   : > { %v2197_v40 = vpop.f32.mrb[36].mxu1 }
 0x336   : > { %v1268_v42 = vpop.f32.mrb[37].mxu1  ;;  %v3354_v49 = vsel %vm1289_vm1, %v2197_v40, -inf }
 0x337   : > { %1320 = vmax.xlane.f32.xlu1 %v1297_v41  ;;  %v3358_v50 = vsel %vm1289_vm1, %v1268_v42, -inf }
 0x339   : > { %v2200_v34 = vpop.f32.mrb[38].mxu1 }
 0x33a   : > { %v1278_v44 = vpop.f32.mrb[39].mxu1  ;;  %v3366_v52 = vsel %vm1289_vm1, %v2200_v34, -inf }
 0x33b   : > { %1318 = vmax.xlane.f32.xlu1 %v1296_v43  ;;  %v3362_v51 = vsel %vm1289_vm1, %v1278_v44, -inf }
 0x33f   : > { %1324 = vmax.xlane.f32.xlu1 %v1299_v45 }
 0x343   : > { %1322 = vmax.xlane.f32.xlu1 %v3342_v46 }
 0x347   : > { %1328 = vmax.xlane.f32.xlu1 %v3346_v47 }
 0x34b   : > { %1326 = vmax.xlane.f32.xlu1 %v3350_v48 }
 0x34f   : > { %1332 = vmax.xlane.f32.xlu1 %v3354_v49 }
 0x353   : > { %1330 = vmax.xlane.f32.xlu1 %v3358_v50 }
 0x357   : > { %1334 = vmax.xlane.f32.xlu1 %v3362_v51 }
 0x35b   : > { %1336 = vmax.xlane.f32.xlu1 %v3366_v52 }
 0x3ac   : > { %v1309_v53 = vpop.xlane.xlu1 %1308 }
 0x3ad   : > { %v1339_v54 = vsub.f32 %v1291_v22, %v1309_v53 }
 0x3af   : > { %v1356_v55 = vmul.f32 1.442695, %v1339_v54 }
 0x3b0   : > { %v1307_v56 = vpop.xlane.xlu1 %1306 }
 0x3b1   : > { %2457 = vpow2.f32 %v1356_v55  ;;  %v1338_v57 = vsub.f32 %v1290_v25, %v1307_v56 }
 0x3b3   : > { %v1354_v58 = vmul.f32 1.442695, %v1338_v57 }
 0x3b4   : > { %v1313_v59 = vpop.xlane.xlu1 %1312 }
 0x3b5   : > { %2459 = vpow2.f32 %v1354_v58  ;;  %v1341_v60 = vsub.f32 %v1293_v28, %v1313_v59 }
 0x3b7   : > { %v1360_v61 = vmul.f32 1.442695, %v1341_v60 }
 0x3b8   : > { %v1311_v62 = vpop.xlane.xlu1 %1310 }
 0x3b9   : > { %2461 = vpow2.f32 %v1360_v61  ;;  %v1340_v63 = vsub.f32 %v1292_v31, %v1311_v62 }
 0x3bb   : > { %v3369_v0 = vpop.eup %2457  ;;  %v1358_v1 = vmul.f32 1.442695, %v1340_v63 }
 0x3bc   : > { %v1317_v2 = vpop.xlane.xlu1 %1316  ;;  %1388 = vadd.xlane.f32.xlu1 %v3369_v0 }
 0x3bd   : > { %2463 = vpow2.f32 %v1358_v1  ;;  %v1343_v3 = vsub.f32 %v1295_v35, %v1317_v2 }
 0x3bf   : > { %v3372_v4 = vpop.eup %2459  ;;  %v1364_v5 = vmul.f32 1.442695, %v1343_v3 }
 0x3c0   : > { %1386 = vadd.xlane.f32.xlu0 %v3372_v4  ;;  %v1315_v6 = vpop.xlane.xlu1 %1314 }
 0x3c1   : > { %2465 = vpow2.f32 %v1364_v5  ;;  %v1342_v7 = vsub.f32 %v1294_v38, %v1315_v6 }
 0x3c3   : > { %v3375_v8 = vpop.eup %2461  ;;  %v1362_v9 = vmul.f32 1.442695, %v1342_v7 }
 0x3c4   : > { %v1321_v10 = vpop.xlane.xlu1 %1320  ;;  %1392 = vadd.xlane.f32.xlu1 %v3375_v8 }
 0x3c5   : > { %2467 = vpow2.f32 %v1362_v9  ;;  %v1345_v11 = vsub.f32 %v1297_v41, %v1321_v10 }
 0x3c7   : > { %v3378_v12 = vpop.eup %2463  ;;  %v1368_v13 = vmul.f32 1.442695, %v1345_v11 }
 0x3c8   : > { %v1319_v14 = vpop.xlane.xlu1 %1318  ;;  %1390 = vadd.xlane.f32.xlu1 %v3378_v12 }
 0x3c9   : > { %2469 = vpow2.f32 %v1368_v13  ;;  %v1344_v15 = vsub.f32 %v1296_v43, %v1319_v14 }
 0x3cb   : > { %v3381_v16 = vpop.eup %2465  ;;  %v1366_v17 = vmul.f32 1.442695, %v1344_v15 }
 0x3cc   : > { %v1325_v18 = vpop.xlane.xlu1 %1324  ;;  %1396 = vadd.xlane.f32.xlu1 %v3381_v16 }
 0x3cd   : > { %2471 = vpow2.f32 %v1366_v17  ;;  %v1347_v19 = vsub.f32 %v1299_v45, %v1325_v18 }
 0x3cf   : > { %v3384_v20 = vpop.eup %2467  ;;  %v1372_v21 = vmul.f32 1.442695, %v1347_v19 }
 0x3d0   : > { %v1323_v22 = vpop.xlane.xlu1 %1322  ;;  %1394 = vadd.xlane.f32.xlu1 %v3384_v20 }
 0x3d1   : > { %2473 = vpow2.f32 %v1372_v21  ;;  %v1346_v23 = vsub.f32 %v3342_v46, %v1323_v22 }
 0x3d3   : > { %v3388_v24 = vpop.eup %2469  ;;  %v1370_v25 = vmul.f32 1.442695, %v1346_v23 }
 0x3d4   : > { %v1329_v26 = vpop.xlane.xlu1 %1328  ;;  %1400 = vadd.xlane.f32.xlu1 %v3388_v24 }
 0x3d5   : > { %2475 = vpow2.f32 %v1370_v25  ;;  %v1349_v27 = vsub.f32 %v3346_v47, %v1329_v26 }
 0x3d7   : > { %v3392_v28 = vpop.eup %2471  ;;  %v1376_v29 = vmul.f32 1.442695, %v1349_v27 }
 0x3d8   : > { %v1327_v30 = vpop.xlane.xlu1 %1326  ;;  %1398 = vadd.xlane.f32.xlu1 %v3392_v28 }
 0x3d9   : > { %2477 = vpow2.f32 %v1376_v29  ;;  %v1348_v31 = vsub.f32 %v3350_v48, %v1327_v30 }
 0x3db   : > { %v3396_v32 = vpop.eup %2473  ;;  %v1374_v33 = vmul.f32 1.442695, %v1348_v31 }
 0x3dc   : > { %v1333_v35 = vpop.xlane.xlu1 %1332  ;;  %1404 = vadd.xlane.f32.xlu1 %v3396_v32 }
 0x3dd   : > { %2479 = vpow2.f32 %v1374_v33  ;;  %v1351_v36 = vsub.f32 %v3354_v49, %v1333_v35 }
 0x3df   : > { %v3400_v37 = vpop.eup %2475  ;;  %v1380_v38 = vmul.f32 1.442695, %v1351_v36 }
 0x3e0   : > { %v1331_v39 = vpop.xlane.xlu1 %1330  ;;  %1402 = vadd.xlane.f32.xlu1 %v3400_v37 }
 0x3e1   : > { %2481 = vpow2.f32 %v1380_v38  ;;  %v1350_v40 = vsub.f32 %v3358_v50, %v1331_v39 }
 0x3e3   : > { %v3404_v41 = vpop.eup %2477  ;;  %v1378_v42 = vmul.f32 1.442695, %v1350_v40 }
 0x3e4   : > { %1408 = vadd.xlane.f32.xlu1 %v3404_v41  ;;  %v1335_v34 = vpop.xlane.xlu1 %1334 }
 0x3e5   : > { %2483 = vpow2.f32 %v1378_v42  ;;  %v1352_v43 = vsub.f32 %v3362_v51, %v1335_v34 }
 0x3e7   : > { %v3408_v44 = vpop.eup %2479  ;;  %v1382_v45 = vmul.f32 1.442695, %v1352_v43 }
 0x3e8   : > { %1406 = vadd.xlane.f32.xlu1 %v3408_v44  ;;  %v1337_v46 = vpop.xlane.xlu1 %1336 }
 0x3e9   : > { %2485 = vpow2.f32 %v1382_v45  ;;  %v1353_v47 = vsub.f32 %v3366_v52, %v1337_v46 }
 0x3eb   : > { %v3412_v48 = vpop.eup %2481  ;;  %v1384_v49 = vmul.f32 1.442695, %v1353_v47 }
 0x3ec   : > { %1412 = vadd.xlane.f32.xlu0 %v3412_v48 }
 0x3ed   : > { %2487 = vpow2.f32 %v1384_v49 }
 0x3ef   : > { %v3415_v50 = vpop.eup %2483 }
 0x3f0   : > { %1410 = vadd.xlane.f32.xlu1 %v3415_v50 }
 0x3f3   : > { %v3418_v51 = vpop.eup %2485 }
 0x3f4   : > { %1414 = vadd.xlane.f32.xlu1 %v3418_v51 }
 0x3f7   : > { %v3421_v53 = vpop.eup %2487 }
 0x3f8   : > { %1416 = vadd.xlane.f32.xlu0 %v3421_v53 }
 0x449   : > { %v1389_v52 = vpop.xlane.xlu1 %1388 }
 0x44a   : > { %2489 = vrcp.f32 %v1389_v52 }
 0x44d   : > { %v1387_v54 = vpop.xlane.xlu0 %1386 }
 0x44e   : > { %2491 = vrcp.f32 %v1387_v54 }
 0x451   : > { %v1393_v55 = vpop.xlane.xlu1 %1392 }
 0x452   : > { %2493 = vrcp.f32 %v1393_v55 }
 0x454   : > { %v2490_v56 = vpop.eup %2489 }
 0x455   : > { %v1435_v57 = vmul.f32 %v2490_v56, %v3369_v0  ;;  %v1391_v58 = vpop.xlane.xlu1 %1390 }
 0x456   : > { %2495 = vrcp.f32 %v1391_v58 }
 0x457   : > { %1628 = vst [vmem:[%s3426_s12 + $0x8] sm:$0xff] %v1435_v57 }
 0x458   : > { %v2492_v59 = vpop.eup %2491 }
 0x459   : > { %v1397_v60 = vpop.xlane.xlu1 %1396  ;;  %v1434_v61 = vmul.f32 %v2492_v59, %v3372_v4 }
 0x45a   : > { %2497 = vrcp.f32 %v1397_v60 }
 0x45b   : > { %2233 = vmatprep.mubr.f32.mxu0 %v1434_v61  ;;  %1627 = vst [vmem:[%s3426_s12] sm:$0xff] %v1434_v61 }
 0x45c   : > { %v2494_v62 = vpop.eup %2493  ;;  %2234 = vmatmul.mubr.f32.vlgmr.msra.gmra.mrb[24].mxu0 %v1435_v57 }
 0x45d   : > { %v1395_v63 = vpop.xlane.xlu1 %1394  ;;  %v1437_v0 = vmul.f32 %v2494_v62, %v3375_v8 }
 0x45e   : > { %2499 = vrcp.f32 %v1395_v63 }
 0x45f   : > { %1630 = vst [vmem:[%s3426_s12 + $0x18] sm:$0xff] %v1437_v0 }
 0x460   : > { %v2496_v1 = vpop.eup %2495 }
 0x461   : > { %v1401_v2 = vpop.xlane.xlu1 %1400  ;;  %v1436_v3 = vmul.f32 %v2496_v1, %v3378_v12 }
 0x462   : > { %2501 = vrcp.f32 %v1401_v2 }
 0x463   : > { %2236 = vmatprep.mubr.f32.mxu0 %v1436_v3  ;;  %1629 = vst [vmem:[%s3426_s12 + $0x10] sm:$0xff] %v1436_v3 }
 0x464   : > { %v2498_v4 = vpop.eup %2497  ;;  %2237 = vmatmul.mubr.f32.gmra.mrb[26].mxu0 %v1437_v0 }
 0x465   : > { %v1399_v5 = vpop.xlane.xlu1 %1398  ;;  %v1439_v6 = vmul.f32 %v2498_v4, %v3381_v16 }
 0x466   : > { %2503 = vrcp.f32 %v1399_v5 }
 0x467   : > { %1632 = vst [vmem:[%s3426_s12 + $0x28] sm:$0xff] %v1439_v6 }
 0x468   : > { %v2500_v7 = vpop.eup %2499 }
 0x469   : > { %v1405_v8 = vpop.xlane.xlu1 %1404  ;;  %v1438_v9 = vmul.f32 %v2500_v7, %v3384_v20 }
 0x46a   : > { %2505 = vrcp.f32 %v1405_v8 }
 0x46b   : > { %2239 = vmatprep.mubr.f32.mxu0 %v1438_v9  ;;  %1631 = vst [vmem:[%s3426_s12 + $0x20] sm:$0xff] %v1438_v9 }
 0x46c   : > { %v2502_v10 = vpop.eup %2501  ;;  %2240 = vmatmul.mubr.f32.gmra.mrb[28].mxu0 %v1439_v6 }
 0x46d   : > { %v1403_v11 = vpop.xlane.xlu1 %1402  ;;  %v1441_v12 = vmul.f32 %v2502_v10, %v3388_v24 }
 0x46e   : > { %2507 = vrcp.f32 %v1403_v11 }
 0x46f   : > { %1634 = vst [vmem:[%s3426_s12 + $0x38] sm:$0xff] %v1441_v12 }
 0x470   : > { %v2504_v13 = vpop.eup %2503 }
 0x471   : > { %v1409_v14 = vpop.xlane.xlu1 %1408  ;;  %v1440_v15 = vmul.f32 %v2504_v13, %v3392_v28 }
 0x472   : > { %2509 = vrcp.f32 %v1409_v14 }
 0x473   : > { %2242 = vmatprep.mubr.f32.mxu0 %v1440_v15  ;;  %1633 = vst [vmem:[%s3426_s12 + $0x30] sm:$0xff] %v1440_v15 }
 0x474   : > { %v2506_v16 = vpop.eup %2505  ;;  %2243 = vmatmul.mubr.f32.gmra.mrb[30].mxu0 %v1441_v12 }
 0x475   : > { %v1407_v17 = vpop.xlane.xlu1 %1406  ;;  %v1443_v18 = vmul.f32 %v2506_v16, %v3396_v32 }
 0x476   : > { %2511 = vrcp.f32 %v1407_v17 }
 0x477   : > { %1636 = vst [vmem:[%s3426_s12 + $0x48] sm:$0xff] %v1443_v18 }
 0x478   : > { %v2508_v19 = vpop.eup %2507 }
 0x479   : > { %v1413_v20 = vpop.xlane.xlu0 %1412  ;;  %v1442_v21 = vmul.f32 %v2508_v19, %v3400_v37 }
 0x47a   : > { %2513 = vrcp.f32 %v1413_v20 }
 0x47b   : > { %2245 = vmatprep.mubr.f32.mxu0 %v1442_v21  ;;  %1635 = vst [vmem:[%s3426_s12 + $0x40] sm:$0xff] %v1442_v21 }
 0x47c   : > { %v2510_v22 = vpop.eup %2509  ;;  %2246 = vmatmul.mubr.f32.gmra.mrb[32].mxu0 %v1443_v18 }
 0x47d   : > { %v1411_v23 = vpop.xlane.xlu1 %1410  ;;  %v1445_v24 = vmul.f32 %v2510_v22, %v3404_v41 }
 0x47e   : > { %2515 = vrcp.f32 %v1411_v23 }
 0x47f   : > { %1638 = vst [vmem:[%s3426_s12 + $0x58] sm:$0xff] %v1445_v24 }
 0x480   : > { %v2512_v25 = vpop.eup %2511 }
 0x481   : > { %v1415_v26 = vpop.xlane.xlu1 %1414  ;;  %v1444_v27 = vmul.f32 %v2512_v25, %v3408_v44 }
 0x482   : > { %2517 = vrcp.f32 %v1415_v26 }
 0x483   : > { %2248 = vmatprep.mubr.f32.mxu0 %v1444_v27  ;;  %1637 = vst [vmem:[%s3426_s12 + $0x50] sm:$0xff] %v1444_v27 }
 0x484   : > { %v2514_v28 = vpop.eup %2513  ;;  %2249 = vmatmul.mubr.f32.gmra.mrb[34].mxu0 %v1445_v24 }
 0x485   : > { %v1417_v29 = vpop.xlane.xlu0 %1416  ;;  %v1447_v30 = vmul.f32 %v2514_v28, %v3412_v48 }
 0x486   : > { %2519 = vrcp.f32 %v1417_v29 }
 0x487   : > { %1640 = vst [vmem:[%s3426_s12 + $0x68] sm:$0xff] %v1447_v30 }
 0x488   : > { %v2516_v31 = vpop.eup %2515 }
 0x489   : > { %v1446_v32 = vmul.f32 %v2516_v31, %v3415_v50 }
 0x48b   : > { %2251 = vmatprep.mubr.f32.mxu0 %v1446_v32  ;;  %1639 = vst [vmem:[%s3426_s12 + $0x60] sm:$0xff] %v1446_v32 }
 0x48c   : > { %v2518_v33 = vpop.eup %2517  ;;  %2252 = vmatmul.mubr.f32.gmra.mrb[36].mxu0 %v1447_v30 }
 0x48d   : > { %v1448_v35 = vmul.f32 %v2518_v33, %v3418_v51 }
 0x48f   : > { %2254 = vmatprep.mubr.f32.mxu0 %v1448_v35  ;;  %1641 = vst [vmem:[%s3426_s12 + $0x70] sm:$0xff] %v1448_v35 }
 0x490   : > { %v2520_v36 = vpop.eup %2519 }
 0x491   : > { %v1449_v37 = vmul.f32 %v2520_v36, %v3421_v53 }
 0x493   : > { %2255 = vmatmul.mubr.f32.gmra.mrb[38].mxu0 %v1449_v37  ;;  %1642 = vst [vmem:[%s3426_s12 + $0x78] sm:$0xff] %v1449_v37 }
 0x494   : > { %2732 = shalt.err (!%p2729_p8)
}
 0x495   : > { %s2733_s20 = scalar_lea.hbm %s3465_s1, 2048  ;;  %s2737_s22 = scalar_lea.hbm %s3611_s17, 4096 }
 0x496   : > { %p2734_p3 = scmp.ne.s32.totalorder %s3465_s1, %s2733_s20  ;;  %p2738_p13 = scmp.lt.u32.totalorder %s3465_s1, %s3611_s17 }
 0x497   : > { %p2739_p1 = scmp.lt.u32.totalorder %s2737_s22, %s2733_s20  ;;  %p2741_p2 = scmp.lt.u32.totalorder %s2733_s20, %s3465_s1 }
 0x498   : > { %p2735_p11 = pnand %p2734_p3, %p3612_p9 }
 0x499   : > { %p2740_p4 = por %p2739_p1, %p2738_p13 }
 0x49a   : > { %p2736_p6 = pneg %p2735_p11 }
 0x49b   : > { %p2742_p10 = por %p2741_p2, %p2740_p4 }
 0x49d   : > { %p2743_p12 = pnand %p2742_p10, %p2736_p6 }
 0x49f   : > { %2746 = shalt.err (!%p2743_p12)
}
 0x4a0   : > { %s2857_s25 = smov 128   ;;  %s2858_s14 = smov 8  }
 0x4a1   : > { %2352 = dma.vmem_to_hbm [thread:$0]  (%p3612_p9), %s3468_s16, 2048, %s3465_s1, %s1649_s24, %s2857_s25, %s2857_s25, %s2858_s14  }
 0x4a2   : > { %s3498_s12 = scalar_lea.vmem [#allocation16], %s3185_s26  ;;  %s3613_s24 = sld [smem:[#allocation26_spill]] }
 0x4a3   : > { %s1664_s26 = sshll.u32 %s3498_s12, 4  ;;  %s1644_s21 = scalar_lea.sflag [#allocation6], %s3182_s11  ;;  %s3522_s26 = int_to_ptr.vmem [resolvable:$true] %s1664_s26 }
 0x4a4   : > { %s2747_s22 = scalar_lea.vmem %s3522_s26, 2048  ;;  %s2859_s30 = smov [#allocation16]  }
 0x4a5   : > { %p2748_p0 = scmp.ne.s32.totalorder %s3522_s26, %s2747_s22  ;;  %s2751_s8 = sshll.u32 %s2859_s30, 4  ;;  %s2752_s8 = int_to_ptr.vmem [resolvable:$false] %s2751_s8 }
 0x4a6   : > { %s2753_s7 = scalar_lea.vmem %s2752_s8, 4096  ;;  %p2754_p8 = scmp.lt.s32.totalorder %s3522_s26, %s2752_s8 }
 0x4a7   : > { %p2749_p7 = pnand %p2748_p0, %p3612_p9  ;;  %p2755_p3 = scmp.lt.s32.totalorder %s2753_s7, %s2747_s22 }
 0x4a8   : > { %s3520_s20 = scalar_lea.hbm %s3613_s24, %s1959_s13 }
 0x4a9   : > { %p2750_p5 = pneg %p2749_p7  ;;  %p2756_p11 = por %p2755_p3, %p2754_p8 }
 0x4ab   : > { %p2757_p6 = pnand %p2756_p11, %p2750_p5 }
 0x52f   : > { %v2235_v38 = vpop.f32.mrb[24].mxu0 }
 0x530   : > { %1612 = vst [vmem:[%s3498_s12 + $0x8] sm:$0xff] %v2235_v38  ;;  %v1532_v39 = vpop.f32.mrb[25].mxu0 }
 0x531   : > { %1611 = vst [vmem:[%s3498_s12] sm:$0xff] %v1532_v39 }
 0x537   : > { %v2238_v40 = vpop.f32.mrb[26].mxu0 }
 0x538   : > { %1614 = vst [vmem:[%s3498_s12 + $0x18] sm:$0xff] %v2238_v40  ;;  %v1542_v41 = vpop.f32.mrb[27].mxu0 }
 0x539   : > { %1613 = vst [vmem:[%s3498_s12 + $0x10] sm:$0xff] %v1542_v41 }
 0x53f   : > { %v2241_v42 = vpop.f32.mrb[28].mxu0 }
 0x540   : > { %1616 = vst [vmem:[%s3498_s12 + $0x28] sm:$0xff] %v2241_v42  ;;  %v1552_v34 = vpop.f32.mrb[29].mxu0 }
 0x541   : > { %1615 = vst [vmem:[%s3498_s12 + $0x20] sm:$0xff] %v1552_v34 }
 0x547   : > { %v2244_v43 = vpop.f32.mrb[30].mxu0 }
 0x548   : > { %1618 = vst [vmem:[%s3498_s12 + $0x38] sm:$0xff] %v2244_v43  ;;  %v1562_v44 = vpop.f32.mrb[31].mxu0 }
 0x549   : > { %1617 = vst [vmem:[%s3498_s12 + $0x30] sm:$0xff] %v1562_v44 }
 0x54f   : > { %v2247_v45 = vpop.f32.mrb[32].mxu0 }
 0x550   : > { %1620 = vst [vmem:[%s3498_s12 + $0x48] sm:$0xff] %v2247_v45  ;;  %v1572_v46 = vpop.f32.mrb[33].mxu0 }
 0x551   : > { %1619 = vst [vmem:[%s3498_s12 + $0x40] sm:$0xff] %v1572_v46 }
 0x557   : > { %v2250_v47 = vpop.f32.mrb[34].mxu0 }
 0x558   : > { %1622 = vst [vmem:[%s3498_s12 + $0x58] sm:$0xff] %v2250_v47  ;;  %v1582_v48 = vpop.f32.mrb[35].mxu0 }
 0x559   : > { %1621 = vst [vmem:[%s3498_s12 + $0x50] sm:$0xff] %v1582_v48 }
 0x55f   : > { %v2253_v49 = vpop.f32.mrb[36].mxu0 }
 0x560   : > { %1624 = vst [vmem:[%s3498_s12 + $0x68] sm:$0xff] %v2253_v49  ;;  %v1592_v50 = vpop.f32.mrb[37].mxu0 }
 0x561   : > { %1623 = vst [vmem:[%s3498_s12 + $0x60] sm:$0xff] %v1592_v50 }
 0x566   : > { %v2256_v51 = vpop.f32.mrb[38].mxu0 }
 0x567   : > { %1626 = vst [vmem:[%s3498_s12 + $0x78] sm:$0xff] %v2256_v51  ;;  %v1602_v53 = vpop.f32.mrb[39].mxu0 }
 0x568   : > { %1625 = vst [vmem:[%s3498_s12 + $0x70] sm:$0xff] %v1602_v53 }
 0x569   : > { %2760 = shalt.err (!%p2757_p6)
}
 0x56a   : > { %s2761_s13 = scalar_lea.hbm %s3520_s20, 2048  ;;  %s2765_s16 = scalar_lea.hbm %s3613_s24, 4096 }
 0x56b   : > { %p2762_p13 = scmp.ne.s32.totalorder %s3520_s20, %s2761_s13  ;;  %p2766_p2 = scmp.lt.u32.totalorder %s3520_s20, %s3613_s24 }
 0x56c   : > { %p2767_p10 = scmp.lt.u32.totalorder %s2765_s16, %s2761_s13  ;;  %p2769_p0 = scmp.lt.u32.totalorder %s2761_s13, %s3520_s20 }
 0x56d   : > { %p2763_p1 = pnand %p2762_p13, %p3612_p9 }
 0x56e   : > { %p2768_p12 = por %p2767_p10, %p2766_p2 }
 0x56f   : > { %p2764_p4 = pneg %p2763_p1 }
 0x570   : > { %p2770_p7 = por %p2769_p0, %p2768_p12 }
 0x572   : > { %p2771_p5 = pnand %p2770_p7, %p2764_p4 }
 0x574   : > { %2774 = shalt.err (!%p2771_p5)
}
 0x575   : > { %2351 = dma.vmem_to_hbm [thread:$0]  (%p3612_p9), %s3522_s26, 2048, %s3520_s20, %s1644_s21, %s2857_s25, %s2857_s25, %s2858_s14  }
 0x576 PF: > { %s1697_s22 = sand.u32 1, %s2825_s27   ;;  %p3614_p8 = scmp.ne.s32.totalorder %s3606_s18, 0 }
 0x577   : > { %p3615_p3 = scmp.ge.s32.totalorder %s2845_s10, 2  ;;  %s1698_s7 = scalar_lea.sflag [#allocation6], %s1697_s22 }
 0x579   : > { %p2379_p11 = pnand %p3615_p3, %p3614_p8 }
 0x57b   : > { %2816 = dma.done.wait (!%p2379_p11), %s1698_s7, 2048  }
 0x57c   : > { %2818 = vsyncadd (!%p2379_p11), %s1698_s7, 4294965248  ;;  %s1707_s19 = scalar_lea.sflag [#allocation18], %s1697_s22 }
 0x57d   : > { %2820 = dma.done.wait (!%p2379_p11), %s1707_s19, 2048  }
 0x57e   : > { %2822 = vsyncadd (!%p2379_p11), %s1707_s19, 4294965248  ;;  %s31_s10 = sadd.s32 1, %s2845_s10   ;;  %s3616_s27 = smov %s2829_s28 }
 0x57f   : > { %p28_p6 = scmp.ge.s32.totalorder %s31_s10, 4   ;;  %s3617_s28 = smov %s2833_s29 }
 0x580   : > { %s3618_s29 = smov %s3126_s15  ;;  %s3619_s30 = smov %s2841_s9 }
 0x581   : > { %s3620_s9 = smov %s3622_s23  ;;  %30 = sbr.rel (!%p28_p6) target bundleno = 15 (0xf), region = 139 }
 0x588   :  { %1712 = vsyncpa [#allocation5], 1 }
 0x589   :  { %1714 = vsyncpa [#allocation5 + $0x1], 1 }
 0x58a   :  { %1715 = vsyncpa [#allocation8], 1 }
 0x58b   :  { %1716 = vsyncpa [#allocation11], 1 }
 0x58c   :  { %1717 = vsyncpa [#allocation14], 1 }
 0x58d   :  { %1718 = vsyncpa [#allocation6], 1 }
 0x58e   :  { %1720 = vsyncpa [#allocation6 + $0x1], 1 }
 0x58f   :  { %1721 = vsyncpa [#allocation18], 1 }
 0x590   :  { %1723 = vsyncpa [#allocation18 + $0x1], 1 }

</bundles_post_ra>
